<compile_context>
chip_gen: v7x
topology: tpu7x:2x2x1
jax: 0.10.0
libtpu: 0.0.40
codegen_flags: <defaults>
</compile_context>

<pallas_src>
import functools
import math

import jax
import jax.numpy as jnp
from jax.experimental import pallas as pl
from jax.experimental.pallas import tpu as pltpu


# ----------------------------------------------------------------------------
# Kernel
# ----------------------------------------------------------------------------
def _mha_kernel(xq_ref, xk_ref, xv_ref,
                wq_ref, wk_ref, wv_ref, wo_ref,
                bq_ref, bk_ref, bv_ref, bo_ref,
                o_ref, ctx_ref, *, num_heads, block_batch):
    """Channel-major multi-head attention over `block_batch` sequences.

    x*_ref : (bt, C, L) bf16 tiles, channel-major (C = embed_dim, L = H*W)
    w*_ref : (E, E) bf16 weights in the native torch layout (out_feat, in_feat)
    b*_ref : (E, 1) f32 biases (column vectors, broadcast over the L lanes)
    o_ref  : (bt, C, L) f32 output tile, channel-major (no transpose on store)
    ctx_ref: (E, L) bf16 VMEM scratch holding the concatenated per-head context
             (hd < 128 path: output projection becomes ONE K=E matmul)
    """
    bt = block_batch
    C = xq_ref.shape[1]
    L = xq_ref.shape[2]
    E = C
    hd = E // num_heads
    scale = 1.0 / math.sqrt(hd)

    # Grid-invariant operands: load once per step, outside the batch loop.
    wq = wq_ref[...]
    wk = wk_ref[...]
    wv = wv_ref[...]
    wo = wo_ref[...]
    bq = bq_ref[...]
    bk = bk_ref[...]
    bv = bv_ref[...]
    bo = bo_ref[...]

    # TODO(synk): for L >= ~1024 add a KV-block grid axis with online-softmax
    # accumulators (flash pattern) so the (L, L) scores never materialize.
    for b in range(bt):          # bt is capped small (<= 4): static unroll.
        xq = xq_ref[b]           # (C, L) bf16 -- contract C directly, no relayout
        xk = xk_ref[b]
        xv = xv_ref[b]

        # Channel-major projections: (E, C) @ (C, L) -> (E, L), f32 accumulate.
        # The 1/sqrt(hd) scale is folded into q here (E*L muls instead of
        # num_heads*L*L muls on the scores).
        q = (jnp.dot(wq, xq, preferred_element_type=jnp.float32) + bq) * scale
        k = jnp.dot(wk, xk, preferred_element_type=jnp.float32) + bk
        v = jnp.dot(wv, xv, preferred_element_type=jnp.float32) + bv
        # Cast to bf16 once (halves the live q/k/v VMEM and vld traffic below).
        q = q.astype(jnp.bfloat16)
        k = k.astype(jnp.bfloat16)
        v = v.astype(jnp.bfloat16)

        if hd >= 128:
            acc = jnp.zeros((E, L), jnp.float32)

        for h in range(num_heads):
            sl = slice(h * hd, (h + 1) * hd)   # sublane slice (aligned if hd%8==0)
            qh = q[sl, :]                      # (hd, Lq)
            vh = v[sl, :]                      # (hd, Lk)
            kh_t = k[sl, :].T                  # (Lk, hd): the only in-kernel relayout

            # scores^T: (Lk, hd) @ (hd, Lq) -> (Lk, Lq); softmax over keys = axis 0,
            # so the max/denom stats come out as (1, Lq) rows -- no stat transposes.
            st = jnp.dot(kh_t, qh, preferred_element_type=jnp.float32)
            m = jnp.max(st, axis=0, keepdims=True)        # (1, Lq)
            pt = jnp.exp(st - m)                          # (Lk, Lq) f32
            denom = jnp.sum(pt, axis=0, keepdims=True)    # (1, Lq)

            # context: (hd, Lk) @ (Lk, Lq) -> (hd, Lq), then normalize the small
            # (hd, Lq) result with the approx reciprocal (EUP slot).
            # NOTE: use exact reciprocal here if bit-parity with torch matters.
            ctx_u = jnp.dot(vh, pt.astype(jnp.bfloat16),
                            preferred_element_type=jnp.float32)
            ctx_h = (ctx_u * pl.reciprocal(denom, approx=True)).astype(jnp.bfloat16)

            if hd >= 128:
                # Per-head fold of the output projection (K = hd >= 128 keeps the
                # MXU fed; avoids materializing the full context).
                acc = acc + jnp.dot(wo[:, sl], ctx_h,
                                    preferred_element_type=jnp.float32)
            else:
                # Stage per-head context at static sublane offsets, then run a
                # single K = E output-projection matmul below.
                ctx_ref[sl, :] = ctx_h

        if hd >= 128:
            out_cm = acc + bo
        else:
            out_cm = jnp.dot(wo, ctx_ref[...],
                             preferred_element_type=jnp.float32) + bo
        # Channel-major store: no transpose on the way out.
        o_ref[b] = out_cm.astype(o_ref.dtype)


# ----------------------------------------------------------------------------
# VMEM budgeting / tiling heuristics
# ----------------------------------------------------------------------------
def _round_up(x, m):
    return ((x + m - 1) // m) * m


def _step_vmem_bytes(bt, C, L, num_heads):
    """Rough per-grid-step VMEM footprint (bytes) used to budget `bt`."""
    del num_heads  # one head's scores live at a time, independent of count
    Lp = _round_up(max(L, 128), 128)
    Cp = _round_up(max(C, 8), 8)
    in_tile = bt * Cp * Lp * 2               # bf16 input tile
    out_tile = bt * Cp * Lp * 4              # f32 output tile
    io = 3 * 2 * in_tile + 2 * out_tile      # pipeline double-buffers
    weights = 4 * Cp * Cp * 2 * 2            # bf16, worst case double-buffered
    biases = 4 * Cp * 128 * 4 * 2            # (C, 1) padded to 128 lanes
    qkv = 3 * Cp * Lp * (4 + 2)              # f32 projection result + bf16 copy
    scores = 2 * Lp * Lp * 4                 # scores^T + exp (f32), one head live
    ctx = Cp * Lp * 2 + Cp * Lp * 4          # ctx scratch (bf16) + out/acc (f32)
    return io + weights + biases + qkv + scores + ctx


def _vmem_capacity_bytes():
    try:
        return int(pltpu.get_tpu_info().vmem_capacity_bytes)
    except Exception:
        return 64 << 20   # conservative default (v7x per-TensorCore VMEM)


def _pick_block_batch(B, C, L, num_heads, budget_bytes, max_bt=4):
    """Largest divisor of B whose footprint fits the budget, preferring >= 2
    (and even) grid steps so megacore / v7x dual-TC sharding has work."""
    divisors = [d for d in range(1, B + 1) if B % d == 0]
    fits = [d for d in divisors
            if d <= max_bt and _step_vmem_bytes(d, C, L, num_heads) <= budget_bytes]
    if not fits:
        return 1
    multi = [d for d in fits if B // d >= 2] or fits
    even = [d for d in multi if (B // d) % 2 == 0] or multi
    return max(even)


# ----------------------------------------------------------------------------
# Wrapper
# ----------------------------------------------------------------------------
def _build_call(B, C, L, bt, num_heads, out_dtype, vmem_limit, single_buffer_invariants):
    kernel = functools.partial(_mha_kernel, num_heads=num_heads, block_batch=bt)
    spec_seq = pl.BlockSpec((bt, C, L), lambda i: (i, 0, 0))
    if single_buffer_invariants:
        # Weights/biases never re-DMA (constant index_map): don't double-buffer.
        spec_w = pl.BlockSpec((C, C), lambda i: (0, 0), pipeline_mode=pl.Buffered(1))
        spec_b = pl.BlockSpec((C, 1), lambda i: (0, 0), pipeline_mode=pl.Buffered(1))
    else:
        spec_w = pl.BlockSpec((C, C), lambda i: (0, 0))
        spec_b = pl.BlockSpec((C, 1), lambda i: (0, 0))
    return pl.pallas_call(
        kernel,
        out_shape=jax.ShapeDtypeStruct((B, C, L), out_dtype),
        grid=(B // bt,),
        in_specs=[spec_seq, spec_seq, spec_seq,
                  spec_w, spec_w, spec_w, spec_w,
                  spec_b, spec_b, spec_b, spec_b],
        out_specs=pl.BlockSpec((bt, C, L), lambda i: (i, 0, 0)),
        scratch_shapes=[pltpu.VMEM((C, L), jnp.bfloat16)],
        compiler_params=pltpu.CompilerParams(
            dimension_semantics=("parallel",),
            vmem_limit_bytes=vmem_limit),
    )


def cross_attention_block(query, key, value, params, num_heads, block_batch=None):
    """Pallas equivalent of CrossAttentionBlock.forward.

    query/key/value: (B, C, H, W) float32 (NCHW, same as the PyTorch module).
    Returns (B, C, H, W) in query.dtype.
    """
    B, C, H, W = query.shape
    assert key.shape == query.shape and value.shape == query.shape
    assert C % num_heads == 0, "embed_dim must be divisible by num_heads"
    L = H * W
    # hd % 8 == 0 keeps all head slices sublane-aligned (still correct otherwise).

    # NCHW -> (B, C, L) is a pure reshape (no HBM transpose). bf16 inputs halve
    # HBM read bytes + input double-buffers; the kernel would cast them anyway.
    q = query.reshape(B, C, L).astype(jnp.bfloat16)
    k = key.reshape(B, C, L).astype(jnp.bfloat16)
    v = value.reshape(B, C, L).astype(jnp.bfloat16)

    wq, wk, wv, wo, bq, bk, bv, bo = params
    wq, wk, wv, wo = (w.astype(jnp.bfloat16) for w in (wq, wk, wv, wo))
    bq, bk, bv, bo = (b.astype(jnp.float32) for b in (bq, bk, bv, bo))

    capacity = _vmem_capacity_bytes()
    budget = int(capacity * 0.6)
    bt = block_batch if block_batch is not None else _pick_block_batch(
        B, C, L, num_heads, budget)
    assert B % bt == 0
    vmem_limit = int(min(capacity * 0.9,
                         max(32 << 20, _step_vmem_bytes(bt, C, L, num_heads) * 1.3)))

    args = (q, k, v, wq, wk, wv, wo, bq, bk, bv, bo)
    try:
        out_cl = _build_call(B, C, L, bt, num_heads, query.dtype, vmem_limit,
                             single_buffer_invariants=True)(*args)
    except Exception:
        # Fallback if this JAX build rejects pipeline_mode=pl.Buffered on
        # pallas_call BlockSpecs (costs only the extra weight double-buffer).
        out_cl = _build_call(B, C, L, bt, num_heads, query.dtype, vmem_limit,
                             single_buffer_invariants=False)(*args)

    # (B, C, L) -> (B, C, H, W): a pure reshape.
    return out_cl.reshape(B, C, H, W)


# ----------------------------------------------------------------------------
# Parameters + pure-JAX reference (for the sanity check)
# ----------------------------------------------------------------------------
def make_params(embed_dim, key):
    """Deterministic params in nn.MultiheadAttention layout.

    torch stores in_proj_weight (3E, E), in_proj_bias (3E,), out_proj (E, E)+(E,).
    Weights are passed to the kernel in their NATIVE (out, in) layout because
    the kernel is channel-major (q^T = Wq @ x^T); biases as (E, 1) columns."""
    ks = jax.random.split(key, 4)
    E = embed_dim
    scale = 1.0 / math.sqrt(E)
    in_proj_w = jax.random.normal(ks[0], (3 * E, E), jnp.float32) * scale
    in_proj_b = jax.random.normal(ks[1], (3 * E,), jnp.float32) * 0.02
    out_w = jax.random.normal(ks[2], (E, E), jnp.float32) * scale
    out_b = jax.random.normal(ks[3], (E,), jnp.float32) * 0.02

    Wq, Wk, Wv = in_proj_w[:E], in_proj_w[E:2 * E], in_proj_w[2 * E:]
    bq, bk, bv = in_proj_b[:E], in_proj_b[E:2 * E], in_proj_b[2 * E:]
    return (Wq, Wk, Wv, out_w,
            bq.reshape(E, 1), bk.reshape(E, 1),
            bv.reshape(E, 1), out_b.reshape(E, 1))


def reference(query, key, value, params, num_heads):
    """Pure-JAX f32 reference of nn.MultiheadAttention on the permuted input."""
    B, C, H, W = query.shape
    L = H * W
    wq, wk, wv, wo, bq, bk, bv, bo = params
    hd = C // num_heads
    scale = 1.0 / math.sqrt(hd)

    def to_seq(x):
        return x.reshape(B, C, L).transpose(0, 2, 1)   # (B, L, C)

    q, k, v = to_seq(query), to_seq(key), to_seq(value)
    Q = q @ wq.T + bq[:, 0]
    K = k @ wk.T + bk[:, 0]
    V = v @ wv.T + bv[:, 0]

    Qh = Q.reshape(B, L, num_heads, hd).transpose(0, 2, 1, 3)
    Kh = K.reshape(B, L, num_heads, hd).transpose(0, 2, 1, 3)
    Vh = V.reshape(B, L, num_heads, hd).transpose(0, 2, 1, 3)

    s = jnp.einsum("bhqd,bhkd->bhqk", Qh, Kh) * scale
    p = jax.nn.softmax(s, axis=-1)
    ctx = jnp.einsum("bhqk,bhkd->bhqd", p, Vh)
    ctx = ctx.transpose(0, 2, 1, 3).reshape(B, L, C)
    out = ctx @ wo.T + bo[:, 0]
    return out.transpose(0, 2, 1).reshape(B, C, H, W)


# ----------------------------------------------------------------------------
# Self-test
# ----------------------------------------------------------------------------
def _check(B, C, H, W, num_heads, seed):
    root = jax.random.PRNGKey(seed)
    kq, kk, kv, kp = jax.random.split(root, 4)
    query = jax.random.normal(kq, (B, C, H, W), jnp.float32)
    key = jax.random.normal(kk, (B, C, H, W), jnp.float32)
    value = jax.random.normal(kv, (B, C, H, W), jnp.float32)
    params = make_params(C, kp)

    out = jax.block_until_ready(
        cross_attention_block(query, key, value, params, num_heads))
    ref = jax.block_until_ready(reference(query, key, value, params, num_heads))
    assert out.shape == (B, C, H, W)
    rel = float(jnp.linalg.norm((out - ref).astype(jnp.float32))
                / (jnp.linalg.norm(ref.astype(jnp.float32)) + 1e-12))
    # bf16 MXU operands + approx-reciprocal softmax give ~1e-2 relative error;
    # a layout / head-slicing bug would be O(1).
    assert rel < 8e-2, f"mismatch vs reference: rel_err={rel}"
    return rel


if __name__ == "__main__":
    _check(2, 32, 8, 8, num_heads=4, seed=0)      # tiny demo shape (hd = 8)
    _check(4, 256, 16, 16, num_heads=8, seed=1)   # larger layout check (hd = 32)
    print("KERNEL_OK")
</pallas_src>

<mosaic_0001>
module attributes {stable_mosaic.version = 11 : i64} {
  func.func @_mha_kernel(%arg0: i32, %arg1: memref<1x32x64xbf16, #tpu.memory_space<vmem>>, %arg2: memref<1x32x64xbf16, #tpu.memory_space<vmem>>, %arg3: memref<1x32x64xbf16, #tpu.memory_space<vmem>>, %arg4: memref<32x32xbf16, #tpu.memory_space<vmem>>, %arg5: memref<32x32xbf16, #tpu.memory_space<vmem>>, %arg6: memref<32x32xbf16, #tpu.memory_space<vmem>>, %arg7: memref<32x32xbf16, #tpu.memory_space<vmem>>, %arg8: memref<32x1xf32, #tpu.memory_space<vmem>>, %arg9: memref<32x1xf32, #tpu.memory_space<vmem>>, %arg10: memref<32x1xf32, #tpu.memory_space<vmem>>, %arg11: memref<32x1xf32, #tpu.memory_space<vmem>>, %arg12: memref<1x32x64xf32, #tpu.memory_space<vmem>>, %arg13: memref<32x64xbf16, #tpu.memory_space<vmem>>) attributes {dimension_semantics = [#tpu.dimension_semantics<parallel>], iteration_bounds = array<i64: 2>, scalar_prefetch = 0 : i64, scratch_operands = 1 : i64, tpu.core_type = #tpu.core_type<tc>, window_params = [{transform_indices = @transform_0, window_bounds = array<i64: 1, 32, 64>}, {transform_indices = @transform_1, window_bounds = array<i64: 1, 32, 64>}, {transform_indices = @transform_2, window_bounds = array<i64: 1, 32, 64>}, {pipeline_mode = #tpu.pipeline_mode<synchronous>, transform_indices = @transform_3, window_bounds = array<i64: 32, 32>}, {pipeline_mode = #tpu.pipeline_mode<synchronous>, transform_indices = @transform_4, window_bounds = array<i64: 32, 32>}, {pipeline_mode = #tpu.pipeline_mode<synchronous>, transform_indices = @transform_5, window_bounds = array<i64: 32, 32>}, {pipeline_mode = #tpu.pipeline_mode<synchronous>, transform_indices = @transform_6, window_bounds = array<i64: 32, 32>}, {pipeline_mode = #tpu.pipeline_mode<synchronous>, transform_indices = @transform_7, window_bounds = array<i64: 32, 1>}, {pipeline_mode = #tpu.pipeline_mode<synchronous>, transform_indices = @transform_8, window_bounds = array<i64: 32, 1>}, {pipeline_mode = #tpu.pipeline_mode<synchronous>, transform_indices = @transform_9, window_bounds = array<i64: 32, 1>}, {pipeline_mode = #tpu.pipeline_mode<synchronous>, transform_indices = @transform_10, window_bounds = array<i64: 32, 1>}, {transform_indices = @transform_11, window_bounds = array<i64: 1, 32, 64>}]} {
    %c0 = arith.constant 0 : index
    %c0_0 = arith.constant 0 : index
    %0 = vector.load %arg4[%c0, %c0_0] : memref<32x32xbf16, #tpu.memory_space<vmem>>, vector<32x32xbf16>
    %c0_1 = arith.constant 0 : index
    %c0_2 = arith.constant 0 : index
    %1 = vector.load %arg5[%c0_1, %c0_2] : memref<32x32xbf16, #tpu.memory_space<vmem>>, vector<32x32xbf16>
    %c0_3 = arith.constant 0 : index
    %c0_4 = arith.constant 0 : index
    %2 = vector.load %arg6[%c0_3, %c0_4] : memref<32x32xbf16, #tpu.memory_space<vmem>>, vector<32x32xbf16>
    %c0_5 = arith.constant 0 : index
    %c0_6 = arith.constant 0 : index
    %3 = vector.load %arg7[%c0_5, %c0_6] : memref<32x32xbf16, #tpu.memory_space<vmem>>, vector<32x32xbf16>
    %c0_7 = arith.constant 0 : index
    %c0_8 = arith.constant 0 : index
    %4 = vector.load %arg8[%c0_7, %c0_8] : memref<32x1xf32, #tpu.memory_space<vmem>>, vector<32x1xf32>
    %c0_9 = arith.constant 0 : index
    %c0_10 = arith.constant 0 : index
    %5 = vector.load %arg9[%c0_9, %c0_10] : memref<32x1xf32, #tpu.memory_space<vmem>>, vector<32x1xf32>
    %c0_11 = arith.constant 0 : index
    %c0_12 = arith.constant 0 : index
    %6 = vector.load %arg10[%c0_11, %c0_12] : memref<32x1xf32, #tpu.memory_space<vmem>>, vector<32x1xf32>
    %c0_13 = arith.constant 0 : index
    %c0_14 = arith.constant 0 : index
    %7 = vector.load %arg11[%c0_13, %c0_14] : memref<32x1xf32, #tpu.memory_space<vmem>>, vector<32x1xf32>
    %c0_15 = arith.constant 0 : index
    %c0_16 = arith.constant 0 : index
    %c0_17 = arith.constant 0 : index
    %8 = vector.load %arg1[%c0_15, %c0_16, %c0_17] : memref<1x32x64xbf16, #tpu.memory_space<vmem>>, vector<1x32x64xbf16>
    %9 = vector.shape_cast %8 : vector<1x32x64xbf16> to vector<32x64xbf16>
    %c0_18 = arith.constant 0 : index
    %c0_19 = arith.constant 0 : index
    %c0_20 = arith.constant 0 : index
    %10 = vector.load %arg2[%c0_18, %c0_19, %c0_20] : memref<1x32x64xbf16, #tpu.memory_space<vmem>>, vector<1x32x64xbf16>
    %11 = vector.shape_cast %10 : vector<1x32x64xbf16> to vector<32x64xbf16>
    %c0_21 = arith.constant 0 : index
    %c0_22 = arith.constant 0 : index
    %c0_23 = arith.constant 0 : index
    %12 = vector.load %arg3[%c0_21, %c0_22, %c0_23] : memref<1x32x64xbf16, #tpu.memory_space<vmem>>, vector<1x32x64xbf16>
    %13 = vector.shape_cast %12 : vector<1x32x64xbf16> to vector<32x64xbf16>
    %cst = arith.constant dense<0.000000e+00> : vector<32x64xf32>
    %14 = tpu.matmul %0, %9, %cst {dimension_numbers = #tpu.dot_dimension_numbers<[1], [0], [0], [1], [0, 0, 1, 1], [], []>} : vector<32x32xbf16>, vector<32x64xbf16>, vector<32x64xf32> -> vector<32x64xf32>
    %15 = vector.broadcast %4 : vector<32x1xf32> to vector<32x64xf32>
    %16 = arith.addf %14, %15 : vector<32x64xf32>
    %cst_24 = arith.constant 0.353553385 : f32
    %17 = vector.broadcast %cst_24 : f32 to vector<32x64xf32>
    %18 = arith.mulf %16, %17 : vector<32x64xf32>
    %cst_25 = arith.constant dense<0.000000e+00> : vector<32x64xf32>
    %19 = tpu.matmul %1, %11, %cst_25 {dimension_numbers = #tpu.dot_dimension_numbers<[1], [0], [0], [1], [0, 0, 1, 1], [], []>} : vector<32x32xbf16>, vector<32x64xbf16>, vector<32x64xf32> -> vector<32x64xf32>
    %20 = vector.broadcast %5 : vector<32x1xf32> to vector<32x64xf32>
    %21 = arith.addf %19, %20 : vector<32x64xf32>
    %cst_26 = arith.constant dense<0.000000e+00> : vector<32x64xf32>
    %22 = tpu.matmul %2, %13, %cst_26 {dimension_numbers = #tpu.dot_dimension_numbers<[1], [0], [0], [1], [0, 0, 1, 1], [], []>} : vector<32x32xbf16>, vector<32x64xbf16>, vector<32x64xf32> -> vector<32x64xf32>
    %23 = vector.broadcast %6 : vector<32x1xf32> to vector<32x64xf32>
    %24 = arith.addf %22, %23 : vector<32x64xf32>
    %25 = arith.truncf %18 : vector<32x64xf32> to vector<32x64xbf16>
    %26 = arith.truncf %21 : vector<32x64xf32> to vector<32x64xbf16>
    %27 = arith.truncf %24 : vector<32x64xf32> to vector<32x64xbf16>
    %28 = vector.extract_strided_slice %25 {offsets = [0, 0], sizes = [8, 64], strides = [1, 1]} : vector<32x64xbf16> to vector<8x64xbf16>
    %29 = vector.extract_strided_slice %27 {offsets = [0, 0], sizes = [8, 64], strides = [1, 1]} : vector<32x64xbf16> to vector<8x64xbf16>
    %30 = vector.extract_strided_slice %26 {offsets = [0, 0], sizes = [8, 64], strides = [1, 1]} : vector<32x64xbf16> to vector<8x64xbf16>
    %31 = tpu.transpose %30, [1, 0] : vector<8x64xbf16> -> vector<64x8xbf16>
    %cst_27 = arith.constant dense<0.000000e+00> : vector<64x64xf32>
    %32 = tpu.matmul %31, %28, %cst_27 {dimension_numbers = #tpu.dot_dimension_numbers<[1], [0], [0], [1], [0, 0, 1, 1], [], []>} : vector<64x8xbf16>, vector<8x64xbf16>, vector<64x64xf32> -> vector<64x64xf32>
    %cst_28 = arith.constant dense<0xFF800000> : vector<64xf32>
    %33 = vector.multi_reduction <maximumf>, %32, %cst_28 [0] : vector<64x64xf32> to vector<64xf32>
    %34 = vector.shape_cast %33 : vector<64xf32> to vector<1x64xf32>
    %35 = vector.broadcast %34 : vector<1x64xf32> to vector<64x64xf32>
    %36 = arith.subf %32, %35 : vector<64x64xf32>
    %37 = math.exp %36 : vector<64x64xf32>
    %cst_29 = arith.constant dense<0.000000e+00> : vector<64xf32>
    %38 = vector.multi_reduction <add>, %37, %cst_29 [0] : vector<64x64xf32> to vector<64xf32>
    %39 = vector.shape_cast %38 : vector<64xf32> to vector<1x64xf32>
    %40 = arith.truncf %37 : vector<64x64xf32> to vector<64x64xbf16>
    %cst_30 = arith.constant dense<0.000000e+00> : vector<8x64xf32>
    %41 = tpu.matmul %29, %40, %cst_30 {dimension_numbers = #tpu.dot_dimension_numbers<[1], [0], [0], [1], [0, 0, 1, 1], [], []>} : vector<8x64xbf16>, vector<64x64xbf16>, vector<8x64xf32> -> vector<8x64xf32>
    %42 = tpu.reciprocal %39 {approx = true} : vector<1x64xf32> -> vector<1x64xf32>
    %43 = vector.broadcast %42 : vector<1x64xf32> to vector<8x64xf32>
    %44 = arith.mulf %41, %43 : vector<8x64xf32>
    %45 = arith.truncf %44 : vector<8x64xf32> to vector<8x64xbf16>
    %c0_31 = arith.constant 0 : index
    %c0_32 = arith.constant 0 : index
    %46 = vector.load %arg13[%c0_31, %c0_32] : memref<32x64xbf16, #tpu.memory_space<vmem>>, vector<8x64xbf16>
    tpu.vector_store %arg13[%c0_31, %c0_32], %45 {strides = array<i32>} : memref<32x64xbf16, #tpu.memory_space<vmem>>, vector<8x64xbf16>,
    %47 = vector.extract_strided_slice %25 {offsets = [8, 0], sizes = [8, 64], strides = [1, 1]} : vector<32x64xbf16> to vector<8x64xbf16>
    %48 = vector.extract_strided_slice %27 {offsets = [8, 0], sizes = [8, 64], strides = [1, 1]} : vector<32x64xbf16> to vector<8x64xbf16>
    %49 = vector.extract_strided_slice %26 {offsets = [8, 0], sizes = [8, 64], strides = [1, 1]} : vector<32x64xbf16> to vector<8x64xbf16>
    %50 = tpu.transpose %49, [1, 0] : vector<8x64xbf16> -> vector<64x8xbf16>
    %cst_33 = arith.constant dense<0.000000e+00> : vector<64x64xf32>
    %51 = tpu.matmul %50, %47, %cst_33 {dimension_numbers = #tpu.dot_dimension_numbers<[1], [0], [0], [1], [0, 0, 1, 1], [], []>} : vector<64x8xbf16>, vector<8x64xbf16>, vector<64x64xf32> -> vector<64x64xf32>
    %cst_34 = arith.constant dense<0xFF800000> : vector<64xf32>
    %52 = vector.multi_reduction <maximumf>, %51, %cst_34 [0] : vector<64x64xf32> to vector<64xf32>
    %53 = vector.shape_cast %52 : vector<64xf32> to vector<1x64xf32>
    %54 = vector.broadcast %53 : vector<1x64xf32> to vector<64x64xf32>
    %55 = arith.subf %51, %54 : vector<64x64xf32>
    %56 = math.exp %55 : vector<64x64xf32>
    %cst_35 = arith.constant dense<0.000000e+00> : vector<64xf32>
    %57 = vector.multi_reduction <add>, %56, %cst_35 [0] : vector<64x64xf32> to vector<64xf32>
    %58 = vector.shape_cast %57 : vector<64xf32> to vector<1x64xf32>
    %59 = arith.truncf %56 : vector<64x64xf32> to vector<64x64xbf16>
    %cst_36 = arith.constant dense<0.000000e+00> : vector<8x64xf32>
    %60 = tpu.matmul %48, %59, %cst_36 {dimension_numbers = #tpu.dot_dimension_numbers<[1], [0], [0], [1], [0, 0, 1, 1], [], []>} : vector<8x64xbf16>, vector<64x64xbf16>, vector<8x64xf32> -> vector<8x64xf32>
    %61 = tpu.reciprocal %58 {approx = true} : vector<1x64xf32> -> vector<1x64xf32>
    %62 = vector.broadcast %61 : vector<1x64xf32> to vector<8x64xf32>
    %63 = arith.mulf %60, %62 : vector<8x64xf32>
    %64 = arith.truncf %63 : vector<8x64xf32> to vector<8x64xbf16>
    %c8 = arith.constant 8 : index
    %c0_37 = arith.constant 0 : index
    %65 = vector.load %arg13[%c8, %c0_37] : memref<32x64xbf16, #tpu.memory_space<vmem>>, vector<8x64xbf16>
    tpu.vector_store %arg13[%c8, %c0_37], %64 {strides = array<i32>} : memref<32x64xbf16, #tpu.memory_space<vmem>>, vector<8x64xbf16>,
    %66 = vector.extract_strided_slice %25 {offsets = [16, 0], sizes = [8, 64], strides = [1, 1]} : vector<32x64xbf16> to vector<8x64xbf16>
    %67 = vector.extract_strided_slice %27 {offsets = [16, 0], sizes = [8, 64], strides = [1, 1]} : vector<32x64xbf16> to vector<8x64xbf16>
    %68 = vector.extract_strided_slice %26 {offsets = [16, 0], sizes = [8, 64], strides = [1, 1]} : vector<32x64xbf16> to vector<8x64xbf16>
    %69 = tpu.transpose %68, [1, 0] : vector<8x64xbf16> -> vector<64x8xbf16>
    %cst_38 = arith.constant dense<0.000000e+00> : vector<64x64xf32>
    %70 = tpu.matmul %69, %66, %cst_38 {dimension_numbers = #tpu.dot_dimension_numbers<[1], [0], [0], [1], [0, 0, 1, 1], [], []>} : vector<64x8xbf16>, vector<8x64xbf16>, vector<64x64xf32> -> vector<64x64xf32>
    %cst_39 = arith.constant dense<0xFF800000> : vector<64xf32>
    %71 = vector.multi_reduction <maximumf>, %70, %cst_39 [0] : vector<64x64xf32> to vector<64xf32>
    %72 = vector.shape_cast %71 : vector<64xf32> to vector<1x64xf32>
    %73 = vector.broadcast %72 : vector<1x64xf32> to vector<64x64xf32>
    %74 = arith.subf %70, %73 : vector<64x64xf32>
    %75 = math.exp %74 : vector<64x64xf32>
    %cst_40 = arith.constant dense<0.000000e+00> : vector<64xf32>
    %76 = vector.multi_reduction <add>, %75, %cst_40 [0] : vector<64x64xf32> to vector<64xf32>
    %77 = vector.shape_cast %76 : vector<64xf32> to vector<1x64xf32>
    %78 = arith.truncf %75 : vector<64x64xf32> to vector<64x64xbf16>
    %cst_41 = arith.constant dense<0.000000e+00> : vector<8x64xf32>
    %79 = tpu.matmul %67, %78, %cst_41 {dimension_numbers = #tpu.dot_dimension_numbers<[1], [0], [0], [1], [0, 0, 1, 1], [], []>} : vector<8x64xbf16>, vector<64x64xbf16>, vector<8x64xf32> -> vector<8x64xf32>
    %80 = tpu.reciprocal %77 {approx = true} : vector<1x64xf32> -> vector<1x64xf32>
    %81 = vector.broadcast %80 : vector<1x64xf32> to vector<8x64xf32>
    %82 = arith.mulf %79, %81 : vector<8x64xf32>
    %83 = arith.truncf %82 : vector<8x64xf32> to vector<8x64xbf16>
    %c16 = arith.constant 16 : index
    %c0_42 = arith.constant 0 : index
    %84 = vector.load %arg13[%c16, %c0_42] : memref<32x64xbf16, #tpu.memory_space<vmem>>, vector<8x64xbf16>
    tpu.vector_store %arg13[%c16, %c0_42], %83 {strides = array<i32>} : memref<32x64xbf16, #tpu.memory_space<vmem>>, vector<8x64xbf16>,
    %85 = vector.extract_strided_slice %25 {offsets = [24, 0], sizes = [8, 64], strides = [1, 1]} : vector<32x64xbf16> to vector<8x64xbf16>
    %86 = vector.extract_strided_slice %27 {offsets = [24, 0], sizes = [8, 64], strides = [1, 1]} : vector<32x64xbf16> to vector<8x64xbf16>
    %87 = vector.extract_strided_slice %26 {offsets = [24, 0], sizes = [8, 64], strides = [1, 1]} : vector<32x64xbf16> to vector<8x64xbf16>
    %88 = tpu.transpose %87, [1, 0] : vector<8x64xbf16> -> vector<64x8xbf16>
    %cst_43 = arith.constant dense<0.000000e+00> : vector<64x64xf32>
    %89 = tpu.matmul %88, %85, %cst_43 {dimension_numbers = #tpu.dot_dimension_numbers<[1], [0], [0], [1], [0, 0, 1, 1], [], []>} : vector<64x8xbf16>, vector<8x64xbf16>, vector<64x64xf32> -> vector<64x64xf32>
    %cst_44 = arith.constant dense<0xFF800000> : vector<64xf32>
    %90 = vector.multi_reduction <maximumf>, %89, %cst_44 [0] : vector<64x64xf32> to vector<64xf32>
    %91 = vector.shape_cast %90 : vector<64xf32> to vector<1x64xf32>
    %92 = vector.broadcast %91 : vector<1x64xf32> to vector<64x64xf32>
    %93 = arith.subf %89, %92 : vector<64x64xf32>
    %94 = math.exp %93 : vector<64x64xf32>
    %cst_45 = arith.constant dense<0.000000e+00> : vector<64xf32>
    %95 = vector.multi_reduction <add>, %94, %cst_45 [0] : vector<64x64xf32> to vector<64xf32>
    %96 = vector.shape_cast %95 : vector<64xf32> to vector<1x64xf32>
    %97 = arith.truncf %94 : vector<64x64xf32> to vector<64x64xbf16>
    %cst_46 = arith.constant dense<0.000000e+00> : vector<8x64xf32>
    %98 = tpu.matmul %86, %97, %cst_46 {dimension_numbers = #tpu.dot_dimension_numbers<[1], [0], [0], [1], [0, 0, 1, 1], [], []>} : vector<8x64xbf16>, vector<64x64xbf16>, vector<8x64xf32> -> vector<8x64xf32>
    %99 = tpu.reciprocal %96 {approx = true} : vector<1x64xf32> -> vector<1x64xf32>
    %100 = vector.broadcast %99 : vector<1x64xf32> to vector<8x64xf32>
    %101 = arith.mulf %98, %100 : vector<8x64xf32>
    %102 = arith.truncf %101 : vector<8x64xf32> to vector<8x64xbf16>
    %c24 = arith.constant 24 : index
    %c0_47 = arith.constant 0 : index
    %103 = vector.load %arg13[%c24, %c0_47] : memref<32x64xbf16, #tpu.memory_space<vmem>>, vector<8x64xbf16>
    tpu.vector_store %arg13[%c24, %c0_47], %102 {strides = array<i32>} : memref<32x64xbf16, #tpu.memory_space<vmem>>, vector<8x64xbf16>,
    %c0_48 = arith.constant 0 : index
    %c0_49 = arith.constant 0 : index
    %104 = vector.load %arg13[%c0_48, %c0_49] : memref<32x64xbf16, #tpu.memory_space<vmem>>, vector<32x64xbf16>
    %cst_50 = arith.constant dense<0.000000e+00> : vector<32x64xf32>
    %105 = tpu.matmul %3, %104, %cst_50 {dimension_numbers = #tpu.dot_dimension_numbers<[1], [0], [0], [1], [0, 0, 1, 1], [], []>} : vector<32x32xbf16>, vector<32x64xbf16>, vector<32x64xf32> -> vector<32x64xf32>
    %106 = vector.broadcast %7 : vector<32x1xf32> to vector<32x64xf32>
    %107 = arith.addf %105, %106 : vector<32x64xf32>
    %c0_51 = arith.constant 0 : index
    %c0_52 = arith.constant 0 : index
    %c0_53 = arith.constant 0 : index
    %108 = vector.load %arg12[%c0_51, %c0_52, %c0_53] : memref<1x32x64xf32, #tpu.memory_space<vmem>>, vector<1x32x64xf32>
    %109 = vector.shape_cast %108 : vector<1x32x64xf32> to vector<32x64xf32>
    %110 = vector.shape_cast %107 : vector<32x64xf32> to vector<1x32x64xf32>
    tpu.vector_store %arg12[%c0_51, %c0_52, %c0_53], %110 {strides = array<i32>} : memref<1x32x64xf32, #tpu.memory_space<vmem>>, vector<1x32x64xf32>,
    return
  }
  func.func @transform_0(%arg0: i32) -> (i32, i32, i32) {
    %c0_i32 = arith.constant 0 : i32
    %c0_i32_0 = arith.constant 0 : i32
    %c0_i32_1 = arith.constant 0 : i32
    return %arg0, %c0_i32, %c0_i32_0 : i32, i32, i32
  }
  func.func @transform_1(%arg0: i32) -> (i32, i32, i32) {
    %c0_i32 = arith.constant 0 : i32
    %c0_i32_0 = arith.constant 0 : i32
    %c0_i32_1 = arith.constant 0 : i32
    return %arg0, %c0_i32, %c0_i32_0 : i32, i32, i32
  }
  func.func @transform_2(%arg0: i32) -> (i32, i32, i32) {
    %c0_i32 = arith.constant 0 : i32
    %c0_i32_0 = arith.constant 0 : i32
    %c0_i32_1 = arith.constant 0 : i32
    return %arg0, %c0_i32, %c0_i32_0 : i32, i32, i32
  }
  func.func @transform_3(%arg0: i32) -> (i32, i32) {
    %c0_i32 = arith.constant 0 : i32
    %c0_i32_0 = arith.constant 0 : i32
    %c0_i32_1 = arith.constant 0 : i32
    return %c0_i32, %c0_i32_0 : i32, i32
  }
  func.func @transform_4(%arg0: i32) -> (i32, i32) {
    %c0_i32 = arith.constant 0 : i32
    %c0_i32_0 = arith.constant 0 : i32
    %c0_i32_1 = arith.constant 0 : i32
    return %c0_i32, %c0_i32_0 : i32, i32
  }
  func.func @transform_5(%arg0: i32) -> (i32, i32) {
    %c0_i32 = arith.constant 0 : i32
    %c0_i32_0 = arith.constant 0 : i32
    %c0_i32_1 = arith.constant 0 : i32
    return %c0_i32, %c0_i32_0 : i32, i32
  }
  func.func @transform_6(%arg0: i32) -> (i32, i32) {
    %c0_i32 = arith.constant 0 : i32
    %c0_i32_0 = arith.constant 0 : i32
    %c0_i32_1 = arith.constant 0 : i32
    return %c0_i32, %c0_i32_0 : i32, i32
  }
  func.func @transform_7(%arg0: i32) -> (i32, i32) {
    %c0_i32 = arith.constant 0 : i32
    %c0_i32_0 = arith.constant 0 : i32
    %c0_i32_1 = arith.constant 0 : i32
    return %c0_i32, %c0_i32_0 : i32, i32
  }
  func.func @transform_8(%arg0: i32) -> (i32, i32) {
    %c0_i32 = arith.constant 0 : i32
    %c0_i32_0 = arith.constant 0 : i32
    %c0_i32_1 = arith.constant 0 : i32
    return %c0_i32, %c0_i32_0 : i32, i32
  }
  func.func @transform_9(%arg0: i32) -> (i32, i32) {
    %c0_i32 = arith.constant 0 : i32
    %c0_i32_0 = arith.constant 0 : i32
    %c0_i32_1 = arith.constant 0 : i32
    return %c0_i32, %c0_i32_0 : i32, i32
  }
  func.func @transform_10(%arg0: i32) -> (i32, i32) {
    %c0_i32 = arith.constant 0 : i32
    %c0_i32_0 = arith.constant 0 : i32
    %c0_i32_1 = arith.constant 0 : i32
    return %c0_i32, %c0_i32_0 : i32, i32
  }
  func.func @transform_11(%arg0: i32) -> (i32, i32, i32) {
    %c0_i32 = arith.constant 0 : i32
    %c0_i32_0 = arith.constant 0 : i32
    %c0_i32_1 = arith.constant 0 : i32
    return %arg0, %c0_i32, %c0_i32_0 : i32, i32, i32
  }
}

module attributes {stable_mosaic.version = 11 : i64} {
  func.func @_mha_kernel(%arg0: i32, %arg1: memref<1x32x64xbf16, #tpu.memory_space<vmem>>, %arg2: memref<1x32x64xbf16, #tpu.memory_space<vmem>>, %arg3: memref<1x32x64xbf16, #tpu.memory_space<vmem>>, %arg4: memref<32x32xbf16, #tpu.memory_space<vmem>>, %arg5: memref<32x32xbf16, #tpu.memory_space<vmem>>, %arg6: memref<32x32xbf16, #tpu.memory_space<vmem>>, %arg7: memref<32x32xbf16, #tpu.memory_space<vmem>>, %arg8: memref<32x1xf32, #tpu.memory_space<vmem>>, %arg9: memref<32x1xf32, #tpu.memory_space<vmem>>, %arg10: memref<32x1xf32, #tpu.memory_space<vmem>>, %arg11: memref<32x1xf32, #tpu.memory_space<vmem>>, %arg12: memref<1x32x64xf32, #tpu.memory_space<vmem>>, %arg13: memref<32x64xbf16, #tpu.memory_space<vmem>>) attributes {dimension_semantics = [#tpu.dimension_semantics<parallel>], iteration_bounds = array<i64: 2>, scalar_prefetch = 0 : i64, scratch_operands = 1 : i64, tpu.core_type = #tpu.core_type<tc>, window_params = [{transform_indices = @transform_0, window_bounds = array<i64: 1, 32, 64>}, {transform_indices = @transform_1, window_bounds = array<i64: 1, 32, 64>}, {transform_indices = @transform_2, window_bounds = array<i64: 1, 32, 64>}, {pipeline_mode = #tpu.pipeline_mode<synchronous>, transform_indices = @transform_3, window_bounds = array<i64: 32, 32>}, {pipeline_mode = #tpu.pipeline_mode<synchronous>, transform_indices = @transform_4, window_bounds = array<i64: 32, 32>}, {pipeline_mode = #tpu.pipeline_mode<synchronous>, transform_indices = @transform_5, window_bounds = array<i64: 32, 32>}, {pipeline_mode = #tpu.pipeline_mode<synchronous>, transform_indices = @transform_6, window_bounds = array<i64: 32, 32>}, {pipeline_mode = #tpu.pipeline_mode<synchronous>, transform_indices = @transform_7, window_bounds = array<i64: 32, 1>}, {pipeline_mode = #tpu.pipeline_mode<synchronous>, transform_indices = @transform_8, window_bounds = array<i64: 32, 1>}, {pipeline_mode = #tpu.pipeline_mode<synchronous>, transform_indices = @transform_9, window_bounds = array<i64: 32, 1>}, {pipeline_mode = #tpu.pipeline_mode<synchronous>, transform_indices = @transform_10, window_bounds = array<i64: 32, 1>}, {transform_indices = @transform_11, window_bounds = array<i64: 1, 32, 64>}]} {
    %c0 = arith.constant 0 : index
    %c0_0 = arith.constant 0 : index
    %0 = vector.load %arg4[%c0, %c0_0] : memref<32x32xbf16, #tpu.memory_space<vmem>>, vector<32x32xbf16>
    %c0_1 = arith.constant 0 : index
    %c0_2 = arith.constant 0 : index
    %1 = vector.load %arg5[%c0_1, %c0_2] : memref<32x32xbf16, #tpu.memory_space<vmem>>, vector<32x32xbf16>
    %c0_3 = arith.constant 0 : index
    %c0_4 = arith.constant 0 : index
    %2 = vector.load %arg6[%c0_3, %c0_4] : memref<32x32xbf16, #tpu.memory_space<vmem>>, vector<32x32xbf16>
    %c0_5 = arith.constant 0 : index
    %c0_6 = arith.constant 0 : index
    %3 = vector.load %arg7[%c0_5, %c0_6] : memref<32x32xbf16, #tpu.memory_space<vmem>>, vector<32x32xbf16>
    %c0_7 = arith.constant 0 : index
    %c0_8 = arith.constant 0 : index
    %4 = vector.load %arg8[%c0_7, %c0_8] : memref<32x1xf32, #tpu.memory_space<vmem>>, vector<32x1xf32>
    %c0_9 = arith.constant 0 : index
    %c0_10 = arith.constant 0 : index
    %5 = vector.load %arg9[%c0_9, %c0_10] : memref<32x1xf32, #tpu.memory_space<vmem>>, vector<32x1xf32>
    %c0_11 = arith.constant 0 : index
    %c0_12 = arith.constant 0 : index
    %6 = vector.load %arg10[%c0_11, %c0_12] : memref<32x1xf32, #tpu.memory_space<vmem>>, vector<32x1xf32>
    %c0_13 = arith.constant 0 : index
    %c0_14 = arith.constant 0 : index
    %7 = vector.load %arg11[%c0_13, %c0_14] : memref<32x1xf32, #tpu.memory_space<vmem>>, vector<32x1xf32>
    %c0_15 = arith.constant 0 : index
    %c0_16 = arith.constant 0 : index
    %c0_17 = arith.constant 0 : index
    %8 = vector.load %arg1[%c0_15, %c0_16, %c0_17] : memref<1x32x64xbf16, #tpu.memory_space<vmem>>, vector<1x32x64xbf16>
    %9 = vector.shape_cast %8 : vector<1x32x64xbf16> to vector<32x64xbf16>
    %c0_18 = arith.constant 0 : index
    %c0_19 = arith.constant 0 : index
    %c0_20 = arith.constant 0 : index
    %10 = vector.load %arg2[%c0_18, %c0_19, %c0_20] : memref<1x32x64xbf16, #tpu.memory_space<vmem>>, vector<1x32x64xbf16>
    %11 = vector.shape_cast %10 : vector<1x32x64xbf16> to vector<32x64xbf16>
    %c0_21 = arith.constant 0 : index
    %c0_22 = arith.constant 0 : index
    %c0_23 = arith.constant 0 : index
    %12 = vector.load %arg3[%c0_21, %c0_22, %c0_23] : memref<1x32x64xbf16, #tpu.memory_space<vmem>>, vector<1x32x64xbf16>
    %13 = vector.shape_cast %12 : vector<1x32x64xbf16> to vector<32x64xbf16>
    %cst = arith.constant dense<0.000000e+00> : vector<32x64xf32>
    %14 = tpu.matmul %0, %9, %cst {dimension_numbers = #tpu.dot_dimension_numbers<[1], [0], [0], [1], [0, 0, 1, 1], [], []>} : vector<32x32xbf16>, vector<32x64xbf16>, vector<32x64xf32> -> vector<32x64xf32>
    %15 = vector.broadcast %4 : vector<32x1xf32> to vector<32x64xf32>
    %16 = arith.addf %14, %15 : vector<32x64xf32>
    %cst_24 = arith.constant 0.353553385 : f32
    %17 = vector.broadcast %cst_24 : f32 to vector<32x64xf32>
    %18 = arith.mulf %16, %17 : vector<32x64xf32>
    %cst_25 = arith.constant dense<0.000000e+00> : vector<32x64xf32>
    %19 = tpu.matmul %1, %11, %cst_25 {dimension_numbers = #tpu.dot_dimension_numbers<[1], [0], [0], [1], [0, 0, 1, 1], [], []>} : vector<32x32xbf16>, vector<32x64xbf16>, vector<32x64xf32> -> vector<32x64xf32>
    %20 = vector.broadcast %5 : vector<32x1xf32> to vector<32x64xf32>
    %21 = arith.addf %19, %20 : vector<32x64xf32>
    %cst_26 = arith.constant dense<0.000000e+00> : vector<32x64xf32>
    %22 = tpu.matmul %2, %13, %cst_26 {dimension_numbers = #tpu.dot_dimension_numbers<[1], [0], [0], [1], [0, 0, 1, 1], [], []>} : vector<32x32xbf16>, vector<32x64xbf16>, vector<32x64xf32> -> vector<32x64xf32>
    %23 = vector.broadcast %6 : vector<32x1xf32> to vector<32x64xf32>
    %24 = arith.addf %22, %23 : vector<32x64xf32>
    %25 = arith.truncf %18 : vector<32x64xf32> to vector<32x64xbf16>
    %26 = arith.truncf %21 : vector<32x64xf32> to vector<32x64xbf16>
    %27 = arith.truncf %24 : vector<32x64xf32> to vector<32x64xbf16>
    %28 = vector.extract_strided_slice %25 {offsets = [0, 0], sizes = [8, 64], strides = [1, 1]} : vector<32x64xbf16> to vector<8x64xbf16>
    %29 = vector.extract_strided_slice %27 {offsets = [0, 0], sizes = [8, 64], strides = [1, 1]} : vector<32x64xbf16> to vector<8x64xbf16>
    %30 = vector.extract_strided_slice %26 {offsets = [0, 0], sizes = [8, 64], strides = [1, 1]} : vector<32x64xbf16> to vector<8x64xbf16>
    %31 = tpu.transpose %30, [1, 0] : vector<8x64xbf16> -> vector<64x8xbf16>
    %cst_27 = arith.constant dense<0.000000e+00> : vector<64x64xf32>
    %32 = tpu.matmul %31, %28, %cst_27 {dimension_numbers = #tpu.dot_dimension_numbers<[1], [0], [0], [1], [0, 0, 1, 1], [], []>} : vector<64x8xbf16>, vector<8x64xbf16>, vector<64x64xf32> -> vector<64x64xf32>
    %cst_28 = arith.constant dense<0xFF800000> : vector<64xf32>
    %33 = vector.multi_reduction <maximumf>, %32, %cst_28 [0] : vector<64x64xf32> to vector<64xf32>
    %34 = vector.shape_cast %33 : vector<64xf32> to vector<1x64xf32>
    %35 = vector.broadcast %34 : vector<1x64xf32> to vector<64x64xf32>
    %36 = arith.subf %32, %35 : vector<64x64xf32>
    %37 = math.exp %36 : vector<64x64xf32>
    %cst_29 = arith.constant dense<0.000000e+00> : vector<64xf32>
    %38 = vector.multi_reduction <add>, %37, %cst_29 [0] : vector<64x64xf32> to vector<64xf32>
    %39 = vector.shape_cast %38 : vector<64xf32> to vector<1x64xf32>
    %40 = arith.truncf %37 : vector<64x64xf32> to vector<64x64xbf16>
    %cst_30 = arith.constant dense<0.000000e+00> : vector<8x64xf32>
    %41 = tpu.matmul %29, %40, %cst_30 {dimension_numbers = #tpu.dot_dimension_numbers<[1], [0], [0], [1], [0, 0, 1, 1], [], []>} : vector<8x64xbf16>, vector<64x64xbf16>, vector<8x64xf32> -> vector<8x64xf32>
    %42 = tpu.reciprocal %39 {approx = true} : vector<1x64xf32> -> vector<1x64xf32>
    %43 = vector.broadcast %42 : vector<1x64xf32> to vector<8x64xf32>
    %44 = arith.mulf %41, %43 : vector<8x64xf32>
    %45 = arith.truncf %44 : vector<8x64xf32> to vector<8x64xbf16>
    %c0_31 = arith.constant 0 : index
    %c0_32 = arith.constant 0 : index
    %46 = vector.load %arg13[%c0_31, %c0_32] : memref<32x64xbf16, #tpu.memory_space<vmem>>, vector<8x64xbf16>
    tpu.vector_store %arg13[%c0_31, %c0_32], %45 {strides = array<i32>} : memref<32x64xbf16, #tpu.memory_space<vmem>>, vector<8x64xbf16>,
    %47 = vector.extract_strided_slice %25 {offsets = [8, 0], sizes = [8, 64], strides = [1, 1]} : vector<32x64xbf16> to vector<8x64xbf16>
    %48 = vector.extract_strided_slice %27 {offsets = [8, 0], sizes = [8, 64], strides = [1, 1]} : vector<32x64xbf16> to vector<8x64xbf16>
    %49 = vector.extract_strided_slice %26 {offsets = [8, 0], sizes = [8, 64], strides = [1, 1]} : vector<32x64xbf16> to vector<8x64xbf16>
    %50 = tpu.transpose %49, [1, 0] : vector<8x64xbf16> -> vector<64x8xbf16>
    %cst_33 = arith.constant dense<0.000000e+00> : vector<64x64xf32>
    %51 = tpu.matmul %50, %47, %cst_33 {dimension_numbers = #tpu.dot_dimension_numbers<[1], [0], [0], [1], [0, 0, 1, 1], [], []>} : vector<64x8xbf16>, vector<8x64xbf16>, vector<64x64xf32> -> vector<64x64xf32>
    %cst_34 = arith.constant dense<0xFF800000> : vector<64xf32>
    %52 = vector.multi_reduction <maximumf>, %51, %cst_34 [0] : vector<64x64xf32> to vector<64xf32>
    %53 = vector.shape_cast %52 : vector<64xf32> to vector<1x64xf32>
    %54 = vector.broadcast %53 : vector<1x64xf32> to vector<64x64xf32>
    %55 = arith.subf %51, %54 : vector<64x64xf32>
    %56 = math.exp %55 : vector<64x64xf32>
    %cst_35 = arith.constant dense<0.000000e+00> : vector<64xf32>
    %57 = vector.multi_reduction <add>, %56, %cst_35 [0] : vector<64x64xf32> to vector<64xf32>
    %58 = vector.shape_cast %57 : vector<64xf32> to vector<1x64xf32>
    %59 = arith.truncf %56 : vector<64x64xf32> to vector<64x64xbf16>
    %cst_36 = arith.constant dense<0.000000e+00> : vector<8x64xf32>
    %60 = tpu.matmul %48, %59, %cst_36 {dimension_numbers = #tpu.dot_dimension_numbers<[1], [0], [0], [1], [0, 0, 1, 1], [], []>} : vector<8x64xbf16>, vector<64x64xbf16>, vector<8x64xf32> -> vector<8x64xf32>
    %61 = tpu.reciprocal %58 {approx = true} : vector<1x64xf32> -> vector<1x64xf32>
    %62 = vector.broadcast %61 : vector<1x64xf32> to vector<8x64xf32>
    %63 = arith.mulf %60, %62 : vector<8x64xf32>
    %64 = arith.truncf %63 : vector<8x64xf32> to vector<8x64xbf16>
    %c8 = arith.constant 8 : index
    %c0_37 = arith.constant 0 : index
    %65 = vector.load %arg13[%c8, %c0_37] : memref<32x64xbf16, #tpu.memory_space<vmem>>, vector<8x64xbf16>
    tpu.vector_store %arg13[%c8, %c0_37], %64 {strides = array<i32>} : memref<32x64xbf16, #tpu.memory_space<vmem>>, vector<8x64xbf16>,
    %66 = vector.extract_strided_slice %25 {offsets = [16, 0], sizes = [8, 64], strides = [1, 1]} : vector<32x64xbf16> to vector<8x64xbf16>
    %67 = vector.extract_strided_slice %27 {offsets = [16, 0], sizes = [8, 64], strides = [1, 1]} : vector<32x64xbf16> to vector<8x64xbf16>
    %68 = vector.extract_strided_slice %26 {offsets = [16, 0], sizes = [8, 64], strides = [1, 1]} : vector<32x64xbf16> to vector<8x64xbf16>
    %69 = tpu.transpose %68, [1, 0] : vector<8x64xbf16> -> vector<64x8xbf16>
    %cst_38 = arith.constant dense<0.000000e+00> : vector<64x64xf32>
    %70 = tpu.matmul %69, %66, %cst_38 {dimension_numbers = #tpu.dot_dimension_numbers<[1], [0], [0], [1], [0, 0, 1, 1], [], []>} : vector<64x8xbf16>, vector<8x64xbf16>, vector<64x64xf32> -> vector<64x64xf32>
    %cst_39 = arith.constant dense<0xFF800000> : vector<64xf32>
    %71 = vector.multi_reduction <maximumf>, %70, %cst_39 [0] : vector<64x64xf32> to vector<64xf32>
    %72 = vector.shape_cast %71 : vector<64xf32> to vector<1x64xf32>
    %73 = vector.broadcast %72 : vector<1x64xf32> to vector<64x64xf32>
    %74 = arith.subf %70, %73 : vector<64x64xf32>
    %75 = math.exp %74 : vector<64x64xf32>
    %cst_40 = arith.constant dense<0.000000e+00> : vector<64xf32>
    %76 = vector.multi_reduction <add>, %75, %cst_40 [0] : vector<64x64xf32> to vector<64xf32>
    %77 = vector.shape_cast %76 : vector<64xf32> to vector<1x64xf32>
    %78 = arith.truncf %75 : vector<64x64xf32> to vector<64x64xbf16>
    %cst_41 = arith.constant dense<0.000000e+00> : vector<8x64xf32>
    %79 = tpu.matmul %67, %78, %cst_41 {dimension_numbers = #tpu.dot_dimension_numbers<[1], [0], [0], [1], [0, 0, 1, 1], [], []>} : vector<8x64xbf16>, vector<64x64xbf16>, vector<8x64xf32> -> vector<8x64xf32>
    %80 = tpu.reciprocal %77 {approx = true} : vector<1x64xf32> -> vector<1x64xf32>
    %81 = vector.broadcast %80 : vector<1x64xf32> to vector<8x64xf32>
    %82 = arith.mulf %79, %81 : vector<8x64xf32>
    %83 = arith.truncf %82 : vector<8x64xf32> to vector<8x64xbf16>
    %c16 = arith.constant 16 : index
    %c0_42 = arith.constant 0 : index
    %84 = vector.load %arg13[%c16, %c0_42] : memref<32x64xbf16, #tpu.memory_space<vmem>>, vector<8x64xbf16>
    tpu.vector_store %arg13[%c16, %c0_42], %83 {strides = array<i32>} : memref<32x64xbf16, #tpu.memory_space<vmem>>, vector<8x64xbf16>,
    %85 = vector.extract_strided_slice %25 {offsets = [24, 0], sizes = [8, 64], strides = [1, 1]} : vector<32x64xbf16> to vector<8x64xbf16>
    %86 = vector.extract_strided_slice %27 {offsets = [24, 0], sizes = [8, 64], strides = [1, 1]} : vector<32x64xbf16> to vector<8x64xbf16>
    %87 = vector.extract_strided_slice %26 {offsets = [24, 0], sizes = [8, 64], strides = [1, 1]} : vector<32x64xbf16> to vector<8x64xbf16>
    %88 = tpu.transpose %87, [1, 0] : vector<8x64xbf16> -> vector<64x8xbf16>
    %cst_43 = arith.constant dense<0.000000e+00> : vector<64x64xf32>
    %89 = tpu.matmul %88, %85, %cst_43 {dimension_numbers = #tpu.dot_dimension_numbers<[1], [0], [0], [1], [0, 0, 1, 1], [], []>} : vector<64x8xbf16>, vector<8x64xbf16>, vector<64x64xf32> -> vector<64x64xf32>
    %cst_44 = arith.constant dense<0xFF800000> : vector<64xf32>
    %90 = vector.multi_reduction <maximumf>, %89, %cst_44 [0] : vector<64x64xf32> to vector<64xf32>
    %91 = vector.shape_cast %90 : vector<64xf32> to vector<1x64xf32>
    %92 = vector.broadcast %91 : vector<1x64xf32> to vector<64x64xf32>
    %93 = arith.subf %89, %92 : vector<64x64xf32>
    %94 = math.exp %93 : vector<64x64xf32>
    %cst_45 = arith.constant dense<0.000000e+00> : vector<64xf32>
    %95 = vector.multi_reduction <add>, %94, %cst_45 [0] : vector<64x64xf32> to vector<64xf32>
    %96 = vector.shape_cast %95 : vector<64xf32> to vector<1x64xf32>
    %97 = arith.truncf %94 : vector<64x64xf32> to vector<64x64xbf16>
    %cst_46 = arith.constant dense<0.000000e+00> : vector<8x64xf32>
    %98 = tpu.matmul %86, %97, %cst_46 {dimension_numbers = #tpu.dot_dimension_numbers<[1], [0], [0], [1], [0, 0, 1, 1], [], []>} : vector<8x64xbf16>, vector<64x64xbf16>, vector<8x64xf32> -> vector<8x64xf32>
    %99 = tpu.reciprocal %96 {approx = true} : vector<1x64xf32> -> vector<1x64xf32>
    %100 = vector.broadcast %99 : vector<1x64xf32> to vector<8x64xf32>
    %101 = arith.mulf %98, %100 : vector<8x64xf32>
    %102 = arith.truncf %101 : vector<8x64xf32> to vector<8x64xbf16>
    %c24 = arith.constant 24 : index
    %c0_47 = arith.constant 0 : index
    %103 = vector.load %arg13[%c24, %c0_47] : memref<32x64xbf16, #tpu.memory_space<vmem>>, vector<8x64xbf16>
    tpu.vector_store %arg13[%c24, %c0_47], %102 {strides = array<i32>} : memref<32x64xbf16, #tpu.memory_space<vmem>>, vector<8x64xbf16>,
    %c0_48 = arith.constant 0 : index
    %c0_49 = arith.constant 0 : index
    %104 = vector.load %arg13[%c0_48, %c0_49] : memref<32x64xbf16, #tpu.memory_space<vmem>>, vector<32x64xbf16>
    %cst_50 = arith.constant dense<0.000000e+00> : vector<32x64xf32>
    %105 = tpu.matmul %3, %104, %cst_50 {dimension_numbers = #tpu.dot_dimension_numbers<[1], [0], [0], [1], [0, 0, 1, 1], [], []>} : vector<32x32xbf16>, vector<32x64xbf16>, vector<32x64xf32> -> vector<32x64xf32>
    %106 = vector.broadcast %7 : vector<32x1xf32> to vector<32x64xf32>
    %107 = arith.addf %105, %106 : vector<32x64xf32>
    %c0_51 = arith.constant 0 : index
    %c0_52 = arith.constant 0 : index
    %c0_53 = arith.constant 0 : index
    %108 = vector.load %arg12[%c0_51, %c0_52, %c0_53] : memref<1x32x64xf32, #tpu.memory_space<vmem>>, vector<1x32x64xf32>
    %109 = vector.shape_cast %108 : vector<1x32x64xf32> to vector<32x64xf32>
    %110 = vector.shape_cast %107 : vector<32x64xf32> to vector<1x32x64xf32>
    tpu.vector_store %arg12[%c0_51, %c0_52, %c0_53], %110 {strides = array<i32>} : memref<1x32x64xf32, #tpu.memory_space<vmem>>, vector<1x32x64xf32>,
    return
  }
  func.func @transform_0(%arg0: i32) -> (i32, i32, i32) {
    %c0_i32 = arith.constant 0 : i32
    %c0_i32_0 = arith.constant 0 : i32
    %c0_i32_1 = arith.constant 0 : i32
    return %arg0, %c0_i32, %c0_i32_0 : i32, i32, i32
  }
  func.func @transform_1(%arg0: i32) -> (i32, i32, i32) {
    %c0_i32 = arith.constant 0 : i32
    %c0_i32_0 = arith.constant 0 : i32
    %c0_i32_1 = arith.constant 0 : i32
    return %arg0, %c0_i32, %c0_i32_0 : i32, i32, i32
  }
  func.func @transform_2(%arg0: i32) -> (i32, i32, i32) {
    %c0_i32 = arith.constant 0 : i32
    %c0_i32_0 = arith.constant 0 : i32
    %c0_i32_1 = arith.constant 0 : i32
    return %arg0, %c0_i32, %c0_i32_0 : i32, i32, i32
  }
  func.func @transform_3(%arg0: i32) -> (i32, i32) {
    %c0_i32 = arith.constant 0 : i32
    %c0_i32_0 = arith.constant 0 : i32
    %c0_i32_1 = arith.constant 0 : i32
    return %c0_i32, %c0_i32_0 : i32, i32
  }
  func.func @transform_4(%arg0: i32) -> (i32, i32) {
    %c0_i32 = arith.constant 0 : i32
    %c0_i32_0 = arith.constant 0 : i32
    %c0_i32_1 = arith.constant 0 : i32
    return %c0_i32, %c0_i32_0 : i32, i32
  }
  func.func @transform_5(%arg0: i32) -> (i32, i32) {
    %c0_i32 = arith.constant 0 : i32
    %c0_i32_0 = arith.constant 0 : i32
    %c0_i32_1 = arith.constant 0 : i32
    return %c0_i32, %c0_i32_0 : i32, i32
  }
  func.func @transform_6(%arg0: i32) -> (i32, i32) {
    %c0_i32 = arith.constant 0 : i32
    %c0_i32_0 = arith.constant 0 : i32
    %c0_i32_1 = arith.constant 0 : i32
    return %c0_i32, %c0_i32_0 : i32, i32
  }
  func.func @transform_7(%arg0: i32) -> (i32, i32) {
    %c0_i32 = arith.constant 0 : i32
    %c0_i32_0 = arith.constant 0 : i32
    %c0_i32_1 = arith.constant 0 : i32
    return %c0_i32, %c0_i32_0 : i32, i32
  }
  func.func @transform_8(%arg0: i32) -> (i32, i32) {
    %c0_i32 = arith.constant 0 : i32
    %c0_i32_0 = arith.constant 0 : i32
    %c0_i32_1 = arith.constant 0 : i32
    return %c0_i32, %c0_i32_0 : i32, i32
  }
  func.func @transform_9(%arg0: i32) -> (i32, i32) {
    %c0_i32 = arith.constant 0 : i32
    %c0_i32_0 = arith.constant 0 : i32
    %c0_i32_1 = arith.constant 0 : i32
    return %c0_i32, %c0_i32_0 : i32, i32
  }
  func.func @transform_10(%arg0: i32) -> (i32, i32) {
    %c0_i32 = arith.constant 0 : i32
    %c0_i32_0 = arith.constant 0 : i32
    %c0_i32_1 = arith.constant 0 : i32
    return %c0_i32, %c0_i32_0 : i32, i32
  }
  func.func @transform_11(%arg0: i32) -> (i32, i32, i32) {
    %c0_i32 = arith.constant 0 : i32
    %c0_i32_0 = arith.constant 0 : i32
    %c0_i32_1 = arith.constant 0 : i32
    return %arg0, %c0_i32, %c0_i32_0 : i32, i32, i32
  }
}

</mosaic_0001>

<bundles_post_ra>
// kernel: tpu_custom_call.1
= control target key start
LH: loop header
LB: loop body
LE: loop exit
PB: predicated region body
PF: predicated region fallthrough
CT: control target
= control target key end

     0   :  { %s2919_s0 = inlined_call_operand.vmem [shape: bf16[2,32,64], index: 0, kind: input, shape index: {}]   ;;  %s2920_s1 = inlined_call_operand.vmem [shape: bf16[2,32,64], index: 1, kind: input, shape index: {}]   ;;  %s2921_s2 = inlined_call_operand.vmem [shape: bf16[2,32,64], index: 2, kind: input, shape index: {}]   ;;  %s2922_s3 = inlined_call_operand.vmem [shape: bf16[32,32], index: 3, kind: input, shape index: {}]   ;;  %s2923_s4 = inlined_call_operand.vmem [shape: bf16[32,32], index: 4, kind: input, shape index: {}]   ;;  %s2924_s5 = inlined_call_operand.vmem [shape: bf16[32,32], index: 5, kind: input, shape index: {}]   ;;  %s2925_s6 = inlined_call_operand.hbm [shape: bf16[32,32], index: 6, kind: input, shape index: {}]   ;;  %s2926_s7 = inlined_call_operand.vmem [shape: f32[32,1], index: 7, kind: input, shape index: {}]   ;;  %s2927_s8 = inlined_call_operand.vmem [shape: f32[32,1], index: 8, kind: input, shape index: {}]   ;;  %s2928_s9 = inlined_call_operand.vmem [shape: f32[32,1], index: 9, kind: input, shape index: {}]   ;;  %s2929_s10 = inlined_call_operand.vmem [shape: f32[32,1], index: 10, kind: input, shape index: {}]   ;;  %s2930_s11 = inlined_call_operand.hbm [shape: f32[2,32,64], index: 11, kind: output, shape index: {}]  }
   0x1   :  { %2934 = sst [smem:[#allocation10_spill]] %s2919_s0 }
   0x2   :  { %16 = vsyncpa [#allocation4], 0 }
   0x3   :  { %17 = vsyncpa [#allocation5], 0 }
   0x4   :  { %19 = vsyncpa [#allocation5 + $0x1], 0  ;;  %s2421_s17 = smov 0   ;;  %s2423_s18 = smov 0  }
   0x5   :  { %s2425_s19 = smov 0   ;;  %s2427_s20 = smov 0  }
   0x6 LB: > { %s2442_s21 = sadd.s32 4294967295, %s2350_s20   ;;  %s1867_s22 = sadd.s32 4294967294, %s2350_s20   ;;  %s2350_s20 = sphi %s2427_s20, %s2950_s20   ;;  %s2346_s19 = sphi %s2425_s19, %s2949_s19   ;;  %s2342_s18 = sphi %s2423_s18, %s2948_s18   ;;  %s2338_s17 = sphi %s2421_s17, %s2947_s17  }
   0x7   : > { %s2446_s23 = sadd.s32 1, %s2350_s20   ;;  %s278_s24 = sadd.s32 1, %s2346_s19 }
   0x8   : > { %s275_s25 = ssub.s32 %s2350_s20, %s2446_s23  ;;  %p288_p0 = scmp.ne.s32.totalorder %s2346_s19, %s2342_s18 }
   0x9   : > { %p276_p1 = scmp.eq.s32.totalorder %s275_s25, 0  ;;  %p289_p2 = scmp.eq.s32.totalorder %s2442_s21, 1 }
   0xa   : > { %p294_p3 = scmp.ne.s32.totalorder %s2342_s18, %s2338_s17  ;;  %p295_p4 = scmp.eq.s32.totalorder %s1867_s22, 1 }
   0xb   : > { %s2457_s26 = scalar_select %p276_p1, %s2346_s19, %s278_s24  }
   0xc   : > { %p2459_p5 = por %p289_p2, %p288_p0  ;;  %p2463_p6 = por %p295_p4, %p294_p3 }
   0xd   : > { %2935 = sst [smem:[#allocation9_spill]] %s2457_s26  ;;  %p1868_p7 = scmp.ge.s32.totalorder %s2350_s20, 1 }
   0xe   : > { %s2936_s27 = scalar_select %p2459_p5, 1, 0 }
   0xf   : > { %s2937_s28 = scalar_select %p2463_p6, 1, 0 }
  0x10   : > { %p302_p8 = scmp.lt.s32.totalorder %s2350_s20, 3  ;;  %p2931_p9 = scmp.eq.s32.totalorder %s2442_s21, 0 }
  0x11   : > { %s2352_s30 = smov [#allocation3]   ;;  %s2256_s16 = scalar_lea.hbm %s2925_s6, 256 }
  0x12   : > { %p2470_p10 = pnand %p1868_p7, %p302_p8  ;;  %s323_s12 = sshll.u32 %s2352_s30, 4  ;;  %s324_s12 = int_to_ptr.vmem [resolvable:$true] %s323_s12 }
  0x13   : > { %p2257_p13 = scmp.ne.s32.totalorder %s2925_s6, %s2256_s16  ;;  %p2263_p3 = scmp.lt.u32.totalorder %s2256_s16, %s2925_s6 }
  0x14   : > { %s2938_s29 = scalar_select %p2470_p10, 1, 0 }
  0x15   : > { %p2117_p11 = pneg %p2470_p10 }
  0x17   : > { %p2478_p12 = pnand %p2931_p9, %p2117_p11 }
  0x19   : > { %p2258_p0 = pneg %p2478_p12 }
  0x1b   : > { %p2259_p1 = pnand %p2258_p0, %p2257_p13 }
  0x1d   : > { %p2260_p2 = pneg %p2259_p1 }
  0x1f   : > { %p2265_p4 = pnand %p2263_p3, %p2260_p2 }
  0x21   : > { %2268 = shalt.err (!%p2265_p4)
}
  0x22   : > { %s2269_s26 = scalar_lea.vmem %s324_s12, 256  ;;  %p2277_p9 = scmp.lt.s32.totalorder %s324_s12, %s324_s12 }
  0x23   : > { %p2270_p7 = scmp.ne.s32.totalorder %s324_s12, %s2269_s26  ;;  %p2278_p6 = scmp.lt.s32.totalorder %s2269_s26, %s2269_s26 }
  0x25   : > { %p2272_p8 = pnand %p2270_p7, %p2258_p0  ;;  %p2279_p5 = por %p2278_p6, %p2277_p9 }
  0x27   : > { %p2273_p11 = pneg %p2272_p8 }
  0x29   : > { %p2280_p10 = pnand %p2279_p5, %p2273_p11 }
  0x2b   : > { %2283 = shalt.err (!%p2280_p10)
}
  0x2c   : > { %s2353_s14 = smov 64   ;;  %s2354_s15 = smov 4  }
  0x2d   : > { %2120 = dma.hbm_to_vmem [thread:$0]  (!%p2478_p12), %s2925_s6, 256, %s324_s12, [#allocation4], %s2353_s14, %s2353_s14, %s2354_s15  }
  0x2e   : > { %p2940_p13 = scmp.ne.s32.totalorder %s2938_s29, 0 }
  0x2f   : > { %p2941_p1 = scmp.eq.s32.totalorder (!%p2940_p13), %s2442_s21, 0 }
  0x30   : > { %375 = sbr.rel (%p2940_p13) target bundleno = 1187 (0x4a3), region = 64 }
  0x37   : > { %2329 = dma.done.wait (%p2941_p1), [#allocation4], 256   ;;  %p2942_p0 = pmov %p2941_p1 }
  0x38   : > { %p425_p5 = scmp.lt.s32.totalorder %s2442_s21, 1  ;;  %v2355_v0 = vmov 0   ;;  %s2943_s0 = sld [smem:[#allocation10_spill]]  ;;  %vm527_vm0 = vcmask 261120   ;;  %v2174_v5 = vld [vmem:[%s2922_s3] sm:$0xff]   ;;  %v2176_v7 = vld [vmem:[%s2922_s3 + $0x8] sm:$0xff]  }
  0x39   : > { %2331 = vsyncadd (%p2942_p0), [#allocation4], 4294967040  ;;  %2168 = vset.pattern.permute.xlu0 %v2355_v0  ;;  %2169 = vset.pattern.permute.xlu1 %v2355_v0  ;;  %v2175_v6 = vld [vmem:[%s2923_s4] sm:$0xff]   ;;  %v2177_v8 = vld [vmem:[%s2923_s4 + $0x8] sm:$0xff]   ;;  %vm816_vm1 = vcmask 1043456   ;;  %vm803_vm2 = vcmask 64512  }
  0x3a   : > { %s426_s26 = scalar_select %p425_p5, %s2442_s21, 1  ;;  %1991 = vmatprep.mubr.msk.bf16.mxu0 %vm527_vm0, %v2174_v5  ;;  %1999 = vmatprep.mubr.msk.bf16.mxu1 %vm527_vm0, %v2175_v6  ;;  %v461_v9 = vld [vmem:[%s2927_s8] sm:$0xff]  ;;  %v463_v10 = vld [vmem:[%s2927_s8 + $0x10] sm:$0xff]  ;;  %v462_v11 = vld [vmem:[%s2927_s8 + $0x8] sm:$0xff]  ;;  %vm2357_vm3 = vmmov 0   ;;  %vm885_vm4 = vcmask 523264  }
  0x3b   : > { %589 = vperm.xlu0 %2168, %v461_v9   ;;  %599 = vperm.xlu1 %2169, %v463_v10   ;;  %v464_v12 = vld [vmem:[%s2927_s8 + $0x18] sm:$0xff]  ;;  %v457_v14 = vld [vmem:[%s2926_s7] sm:$0xff]  ;;  %v458_v17 = vld [vmem:[%s2926_s7 + $0x8] sm:$0xff]  ;;  %vm1002_vm5 = vcmask 519168   ;;  %vm1226_vm6 = vcmask 523268   ;;  %s422_s22 = sand.u32 1, %s2342_s18  }
  0x3c   : > { %s1927_s13 = sshll.u32 %s426_s26, 4  ;;  %v2180_v16 = vld [vmem:[%s2924_s5] sm:$0xff]   ;;  %v459_v18 = vld [vmem:[%s2926_s7 + $0x10] sm:$0xff]  ;;  %v460_v19 = vld [vmem:[%s2926_s7 + $0x18] sm:$0xff]  ;;  %s1873_s24 = sshll.u32 %s422_s22, 5 }
  0x3d   : > { %s434_s14 = scalar_lea.vmem %s2920_s1, %s1927_s13  ;;  %s439_s16 = scalar_lea.vmem %s2921_s2, %s1927_s13  ;;  %v2181_v20 = vld [vmem:[%s2924_s5 + $0x8] sm:$0xff]   ;;  %v465_v62 = vld [vmem:[%s2928_s9] sm:$0xff]  ;;  %v468_v63 = vld [vmem:[%s2928_s9 + $0x18] sm:$0xff] }
  0x3e   : > { %s429_s12 = scalar_lea.vmem %s2943_s0, %s1927_s13  ;;  %v2171_v2 = vld [vmem:[%s434_s14] sm:$0xff]   ;;  %v2173_v4 = vld [vmem:[%s434_s14 + $0x8] sm:$0xff]   ;;  %v467_v0 = vld [vmem:[%s2928_s9 + $0x10] sm:$0xff]  ;;  %s424_s0 = scalar_lea.vmem [#allocation6], %s1873_s24 }
  0x3f   : > { %v2170_v1 = vld [vmem:[%s429_s12] sm:$0xff]   ;;  %v2172_v3 = vld [vmem:[%s429_s12 + $0x8] sm:$0xff]   ;;  %1995 = vmatprep.subr.bf16.mxu1 %v2171_v2  ;;  %594 = vperm.xlu0 %2168, %v462_v11   ;;  %s1769_s26 = sshll.u32 %s424_s0, 4  ;;  %s2878_s29 = scalar_lea.sflag [#allocation5], %s422_s22  ;;  %s2868_s26 = int_to_ptr.vmem [resolvable:$true] %s1769_s26 }
  0x40   : > { %1987 = vmatprep.subr.bf16.mxu0 %v2170_v1  ;;  %1996 = vmatpush3.bf16.msra.mxu1 %v2171_v2  ;;  %v2178_v13 = vld [vmem:[%s439_s16] sm:$0xff]   ;;  %v2179_v15 = vld [vmem:[%s439_s16 + $0x8] sm:$0xff]   ;;  %s1930_s16 = sshll.u32 %s2442_s21, 9  ;;  %s2284_s30 = scalar_lea.vmem %s2868_s26, 512 }
  0x41   : > { %1988 = vmatpush3.bf16.msra.mxu0 %v2170_v1  ;;  %1997 = vmatprep.subr.bf16.mxu1 %v2173_v4  ;;  %v466_v59 = vld [vmem:[%s2928_s9 + $0x8] sm:$0xff]  ;;  %v469_v2 = vld [vmem:[%s2929_s10] sm:$0xff]  ;;  %s2874_s21 = scalar_lea.hbm %s2930_s11, %s1930_s16  ;;  %p2285_p6 = scmp.ne.s32.totalorder %s2868_s26, %s2284_s30 }
  0x42   : > { %1989 = vmatprep.subr.bf16.mxu0 %v2172_v3  ;;  %604 = vperm.xlu1 %2169, %v464_v12   ;;  %v470_v1 = vld [vmem:[%s2929_s10 + $0x8] sm:$0xff]  ;;  %p2944_p9 = scmp.ne.s32.totalorder %s2936_s27, 0  ;;  %s2358_s14 = smov [#allocation6]  }
  0x43   : > { %487 = vperm.xlu0 %2168, %v457_v14   ;;  %s2288_s13 = sshll.u32 %s2358_s14, 4  ;;  %s2289_s13 = int_to_ptr.vmem [resolvable:$false] %s2288_s13 }
  0x44   : > { %1998 = vmatpush3.bf16.msra.mxu1 %v2173_v4  ;;  %v471_v4 = vld [vmem:[%s2929_s10 + $0x10] sm:$0xff]  ;;  %p2286_p10 = pnand %p2285_p6, %p2944_p9  ;;  %s2290_s15 = scalar_lea.vmem %s2289_s13, 1024 }
  0x45   : > { %1990 = vmatpush3.bf16.msra.mxu0 %v2172_v3  ;;  %v472_v3 = vld [vmem:[%s2929_s10 + $0x18] sm:$0xff]  ;;  %p2291_p2 = scmp.lt.s32.totalorder %s2868_s26, %s2289_s13  ;;  %p2292_p3 = scmp.lt.s32.totalorder %s2290_s15, %s2284_s30 }
  0x46   : > { %2003 = vmatprep.subr.bf16.mxu0 %v2178_v13  ;;  %492 = vperm.xlu1 %2169, %v458_v17   ;;  %p2287_p12 = pneg %p2286_p10 }
  0x47   : > { %2000 = vmatmul.mubr.msk.bf16.vlgmr.msra.gmra.mrb[0].mxu1 %vm527_vm0, %v2177_v8  ;;  %497 = vperm.xlu0 %2168, %v459_v18   ;;  %p2293_p4 = por %p2292_p3, %p2291_p2 }
  0x48   : > { %1992 = vmatmul.mubr.msk.bf16.vlgmr.msra.gmra.mrb[0].mxu0 %vm527_vm0, %v2176_v7 }
  0x49   : > { %2004 = vmatpush3.bf16.msra.mxu0 %v2178_v13  ;;  %2007 = vmatprep.mubr.msk.bf16.mxu0 %vm527_vm0, %v2180_v16  ;;  %p2294_p7 = pnand %p2293_p4, %p2287_p12 }
  0x4a   : > { %2005 = vmatprep.subr.bf16.mxu0 %v2179_v15  ;;  %502 = vperm.xlu1 %2169, %v460_v19  }
  0x4d   : > { %2006 = vmatpush3.bf16.msra.mxu0 %v2179_v15 }
  0x50   : > { %2008 = vmatmul.mubr.msk.bf16.vlgmr.msra.gmra.mrb[4].mxu0 %vm527_vm0, %v2181_v20 }
  0xba   : > { %v590_v21 = vpop.permute.xlu0 %589  ;;  %v600_v22 = vpop.permute.xlu1 %599 }
  0xbe   : > { %v595_v23 = vpop.permute.xlu0 %594 }
  0xc1   : > { %v605_v24 = vpop.permute.xlu1 %604 }
  0xc2   : > { %v488_v25 = vpop.permute.xlu0 %487 }
  0xc5   : > { %v493_v26 = vpop.permute.xlu1 %492 }
  0xc6   : > { %v498_v27 = vpop.permute.xlu0 %497 }
  0xc9   : > { %v503_v29 = vpop.permute.xlu1 %502 }
 0x11a   : > { %v2001_v31 = vpop.f32.mrb[0].mxu1 }
 0x11b   : > { %v1993_v28 = vpop.f32.mrb[0].mxu0  ;;  %v669_v34 = vpop.f32.mrb[1].mxu1  ;;  %v678_v39 = vadd.f32 %v2001_v31, %v600_v22 }
 0x11c   : > { %v577_v30 = vadd.f32 %v1993_v28, %v498_v27  ;;  %v568_v32 = vpop.f32.mrb[1].mxu0  ;;  %v2002_v37 = vpop.f32.mrb[2].mxu1  ;;  %v670_v44 = vadd.f32 %v669_v34, %v590_v21 }
 0x11d   : > { %v569_v33 = vadd.f32 %v568_v32, %v488_v25  ;;  %v1994_v35 = vpop.f32.mrb[2].mxu0  ;;  %v681_v40 = vadd.f32 %v2002_v37, %v605_v24  ;;  %v672_v42 = vpop.f32.mrb[3].mxu1 }
 0x11e   : > { %v580_v36 = vadd.f32 %v1994_v35, %v503_v29  ;;  %v571_v38 = vpop.f32.mrb[3].mxu0  ;;  %v585_v43 = vmul.f32 0.35355338, %v577_v30  ;;  %v673_v46 = vadd.f32 %v672_v42, %v595_v23  ;;  %v2356_v35 = vmov 0.0  }
 0x11f   : > { %v572_v41 = vadd.f32 %v571_v38, %v493_v26  ;;  %v583_v47 = vmul.f32 0.35355338, %v569_v33  ;;  %v784_v48 = vpack.c.bf16 %v681_v40, %v678_v39  ;;  %2021 = vmatprep.subr.bf16.mxu0 %v2356_v35  ;;  %2029 = vmatprep.mubr.msk.bf16.mxu0 %vm2357_vm3, %v2356_v35 }
 0x120   : > { %v586_v45 = vmul.f32 0.35355338, %v580_v36  ;;  %v783_v51 = vpack.c.bf16 %v673_v46, %v670_v44 }
 0x121   : > { %v584_v49 = vmul.f32 0.35355338, %v572_v41  ;;  %v1442_v56 = vrot.slane %v784_v48, 4 }
 0x122   : > { %v2563_v50 = vpack.c.bf16 %v586_v45, %v585_v43  ;;  %787 = vxpose.xlu0.c.b16.start.end [1/1] (short) (narrow) %v783_v51, 64  ;;  %v1005_v53 = vrot.slane %v783_v51, 4 }
 0x123   : > { %v781_v52 = vpack.c.bf16 %v584_v49, %v583_v47  ;;  %v2568_v57 = vpop.f32.mrb[4].mxu0 }
 0x124   : > { %1007 = vxpose.xlu1.c.b16.start.end [1/1] (short) (narrow) %v1005_v53, 64  ;;  %v2570_v58 = vpop.f32.mrb[5].mxu0  ;;  %v1257_v13 = vsel %vm816_vm1, %v2563_v50, 0  ;;  %v1461_v14 = vrot.slane %v2563_v50, 4 }
 0x125   : > { %2107 = vmatprep.subr.msk.bf16.mxu1 %vm816_vm1, %v781_v52  ;;  %v818_v54 = vsel %vm816_vm1, %v781_v52, 0  ;;  %v1024_v55 = vrot.slane %v781_v52, 4  ;;  %v2575_v60 = vpop.f32.mrb[6].mxu0 }
 0x126   : > { %2012 = vmatpush3.bf16.msra.mxu1 %v818_v54  ;;  %v769_v61 = vpop.f32.mrb[7].mxu0  ;;  %v1475_v20 = vsel %vm816_vm1, %v1461_v14, 0 }
 0x127   : > { %2108 = vmatprep.subr.msk.bf16.mxu1 %vm816_vm1, %v1024_v55  ;;  %v1038_v7 = vsel %vm816_vm1, %v1024_v55, 0 }
 0x12f   : > { %1228 = vxpose.xlu0.c.b16.start.end [1/1] (short) (narrow) %v784_v48, 64 }
 0x131   : > { %1444 = vxpose.xlu1.c.b16.start.end [1/1] (short) (narrow) %v1442_v56, 64 }
 0x141   : > { %691 = vperm.xlu1 %2169, %v466_v59  }
 0x144   : > { %686 = vperm.xlu0 %2168, %v465_v62  }
 0x145   : > { %701 = vperm.xlu1 %2169, %v468_v63  }
 0x148   : > { %696 = vperm.xlu0 %2168, %v467_v0  }
 0x149   : > { %1673 = vperm.xlu1 %2169, %v470_v1  }
 0x14c   : > { %1668 = vperm.xlu0 %2168, %v469_v2  }
 0x14d   : > { %1683 = vperm.xlu1 %2169, %v472_v3  }
 0x150   : > { %1678 = vperm.xlu0 %2168, %v471_v4  }
 0x188   : > { %v795_v5 = vpop.trf.xlu0 }
 0x189   : > { %2013 = vmatprep.mubr.msk.bf16.mxu1 %vm803_vm2, %v795_v5 }
 0x18a   : > { %v1015_v8 = vpop.trf.xlu1 }
 0x18c   : > { %v796_v6 = vpop.trf.xlu0 }
 0x18d   : > { %2014 = vmatmul.mubr.msk.bf16.vlgmr.msra.gmra.mrb[4].mxu1 %vm803_vm2, %v796_v6 }
 0x18e   : > { %2034 = vmatpush3.bf16.msra.mxu1 %v1038_v7  ;;  %v1016_v11 = vpop.trf.xlu1 }
 0x18f   : > { %2109 = vmatprep.subr.msk.bf16.mxu1 %vm816_vm1, %v2563_v50 }
 0x190   : > { %v797_v9 = vpop.trf.xlu0 }
 0x191   : > { %2017 = vmatprep.mubr.msk.bf16.mxu1 %vm803_vm2, %v797_v9 }
 0x192   : > { %v1017_v12 = vpop.trf.xlu1 }
 0x194   : > { %v798_v10 = vpop.trf.xlu0 }
 0x195   : > { %2018 = vmatmul.mubr.msk.bf16.gmra.mrb[8].mxu1 %vm803_vm2, %v798_v10 }
 0x196   : > { %2035 = vmatprep.mubr.msk.bf16.mxu1 %vm803_vm2, %v1015_v8  ;;  %v1018_v16 = vpop.trf.xlu1 }
 0x198   : > { %v1236_v15 = vpop.trf.xlu0 }
 0x19a   : > { %v1452_v18 = vpop.trf.xlu1 }
 0x19c   : > { %v1237_v17 = vpop.trf.xlu0 }
 0x19d   : > { %2036 = vmatmul.mubr.msk.bf16.vlgmr.msra.gmra.mrb[12].mxu1 %vm803_vm2, %v1016_v11 }
 0x19e   : > { %2056 = vmatpush3.bf16.msra.mxu1 %v1257_v13  ;;  %2039 = vmatprep.mubr.msk.bf16.mxu1 %vm803_vm2, %v1017_v12  ;;  %v1453_v21 = vpop.trf.xlu1 }
 0x19f   : > { %2110 = vmatprep.subr.msk.bf16.mxu1 %vm816_vm1, %v1461_v14 }
 0x1a0   : > { %v1238_v19 = vpop.trf.xlu0 }
 0x1a2   : > { %v1454_v23 = vpop.trf.xlu1 }
 0x1a4   : > { %v1239_v22 = vpop.trf.xlu0 }
 0x1a5   : > { %2040 = vmatmul.mubr.msk.bf16.gmra.mrb[16].mxu1 %vm803_vm2, %v1018_v16 }
 0x1a6   : > { %2057 = vmatprep.mubr.msk.bf16.mxu1 %vm803_vm2, %v1236_v15  ;;  %v1455_v24 = vpop.trf.xlu1 }
 0x1ad   : > { %2058 = vmatmul.mubr.msk.bf16.vlgmr.msra.gmra.mrb[20].mxu1 %vm803_vm2, %v1237_v17 }
 0x1ae   : > { %2078 = vmatpush3.bf16.msra.mxu1 %v1475_v20  ;;  %2061 = vmatprep.mubr.msk.bf16.mxu1 %vm803_vm2, %v1238_v19 }
 0x1b5   : > { %2062 = vmatmul.mubr.msk.bf16.gmra.mrb[24].mxu1 %vm803_vm2, %v1239_v22 }
 0x1b6   : > { %2079 = vmatprep.mubr.msk.bf16.mxu1 %vm803_vm2, %v1452_v18 }
 0x1bd   : > { %2080 = vmatmul.mubr.msk.bf16.vlgmr.msra.gmra.mrb[28].mxu1 %vm803_vm2, %v1453_v21 }
 0x1be   : > { %2083 = vmatprep.mubr.msk.bf16.mxu1 %vm803_vm2, %v1454_v23 }
 0x1c0   : > { %v692_v25 = vpop.permute.xlu1 %691 }
 0x1c1   : > { %v770_v27 = vadd.f32 %v769_v61, %v692_v25 }
 0x1c3   : > { %v687_v26 = vpop.permute.xlu0 %686 }
 0x1c4   : > { %v767_v28 = vadd.f32 %v2570_v58, %v687_v26  ;;  %v702_v29 = vpop.permute.xlu1 %701 }
 0x1c5   : > { %2084 = vmatmul.mubr.msk.bf16.gmra.mrb[32].mxu1 %vm803_vm2, %v1455_v24  ;;  %v778_v32 = vadd.f32 %v2575_v60, %v702_v29 }
 0x1c6   : > { %v2623_v30 = vpack.c.bf16 %v770_v27, %v767_v28 }
 0x1c7   : > { %v697_v31 = vpop.permute.xlu0 %696 }
 0x1c8   : > { %v775_v33 = vadd.f32 %v2568_v57, %v697_v31 }
 0x1ca   : > { %v2627_v34 = vpack.c.bf16 %v778_v32, %v775_v33 }
 0x260   : > { %v2015_v36 = vpop.f32.mrb[4].mxu1 }
 0x261   : > { %v854_v37 = vpop.f32.mrb[5].mxu1  ;;  %v888_v41 = vsel %vm885_vm4, %v2015_v36, -inf }
 0x262   : > { %v2016_v38 = vpop.f32.mrb[6].mxu1  ;;  %v886_v44 = vsel %vm885_vm4, %v854_v37, -inf }
 0x263   : > { %v857_v39 = vpop.f32.mrb[7].mxu1  ;;  %v889_v48 = vsel %vm885_vm4, %v2016_v38, -inf }
 0x264   : > { %v887_v52 = vsel %vm885_vm4, %v857_v39, -inf }
 0x268   : > { %v2632_v40 = vpop.f32.mrb[8].mxu1 }
 0x269   : > { %v894_v42 = vsel %vm885_vm4, %v2632_v40, -inf  ;;  %v870_v43 = vpop.f32.mrb[9].mxu1 }
 0x26a   : > { %v895_v45 = vmax.f32 %v888_v41, %v894_v42  ;;  %v890_v46 = vsel %vm885_vm4, %v870_v43, -inf  ;;  %v2639_v47 = vpop.f32.mrb[10].mxu1 }
 0x26b   : > { %v891_v49 = vmax.f32 %v886_v44, %v890_v46  ;;  %v896_v50 = vsel %vm885_vm4, %v2639_v47, -inf  ;;  %v873_v51 = vpop.f32.mrb[11].mxu1 }
 0x26c   : > { %v897_v53 = vmax.f32 %v889_v48, %v896_v50  ;;  %v892_v54 = vsel %vm885_vm4, %v873_v51, -inf }
 0x26d   : > { %v893_v55 = vmax.f32 %v887_v52, %v892_v54 }
 0x26e   : > { %v899_v56 = vmax.f32 %v895_v45, %v897_v53 }
 0x26f   : > { %v898_v57 = vmax.f32 %v891_v49, %v893_v55 }
 0x270   : > { %v2646_v58 = vpop.f32.mrb[12].mxu1 }
 0x271   : > { %v900_v59 = vmax.f32 %v898_v57, %v899_v56  ;;  %v2648_v60 = vpop.f32.mrb[13].mxu1  ;;  %v1107_v4 = vsel %vm885_vm4, %v2646_v58, -inf }
 0x272   : > { %v2650_v61 = vpop.f32.mrb[14].mxu1  ;;  %v1105_v7 = vsel %vm885_vm4, %v2648_v60, -inf }
 0x273   : > { %v901_v62 = vrot.slane %v900_v59, 4  ;;  %v2652_v63 = vpop.f32.mrb[15].mxu1  ;;  %v1108_v12 = vsel %vm885_vm4, %v2650_v61, -inf }
 0x274   : > { %v1106_v16 = vsel %vm885_vm4, %v2652_v63, -inf }
 0x275   : > { %v902_v0 = vmax.f32 %v900_v59, %v901_v62 }
 0x277   : > { %v903_v1 = vrot.slane %v902_v0, 2 }
 0x278   : > { %v2654_v2 = vpop.f32.mrb[16].mxu1 }
 0x279   : > { %v904_v3 = vmax.f32 %v902_v0, %v903_v1  ;;  %v1113_v5 = vsel %vm885_vm4, %v2654_v2, -inf  ;;  %v2660_v6 = vpop.f32.mrb[17].mxu1 }
 0x27a   : > { %v1114_v8 = vmax.f32 %v1107_v4, %v1113_v5  ;;  %v1109_v9 = vsel %vm885_vm4, %v2660_v6, -inf  ;;  %v2666_v10 = vpop.f32.mrb[18].mxu1 }
 0x27b   : > { %v905_v11 = vrot.slane %v904_v3, 1  ;;  %v1110_v13 = vmax.f32 %v1105_v7, %v1109_v9  ;;  %v1115_v14 = vsel %vm885_vm4, %v2666_v10, -inf  ;;  %v2672_v15 = vpop.f32.mrb[19].mxu1 }
 0x27c   : > { %v1116_v17 = vmax.f32 %v1108_v12, %v1115_v14  ;;  %v1111_v18 = vsel %vm885_vm4, %v2672_v15, -inf }
 0x27d   : > { %v906_v19 = vmax.f32 %v904_v3, %v905_v11  ;;  %v1112_v20 = vmax.f32 %v1106_v16, %v1111_v18 }
 0x27e   : > { %v1118_v21 = vmax.f32 %v1114_v8, %v1116_v17 }
 0x27f   : > { %v907_v22 = vsub.f32 %v854_v37, %v906_v19  ;;  %v908_v23 = vsub.f32 %v857_v39, %v906_v19  ;;  %v909_v24 = vsub.f32 %v2015_v36, %v906_v19  ;;  %v910_v25 = vsub.f32 %v2016_v38, %v906_v19 }
 0x280   : > { %v911_v26 = vsub.f32 %v870_v43, %v906_v19  ;;  %v912_v27 = vsub.f32 %v873_v51, %v906_v19  ;;  %v913_v28 = vsub.f32 %v2632_v40, %v906_v19  ;;  %v1117_v29 = vmax.f32 %v1110_v13, %v1112_v20  ;;  %v2679_v31 = vpop.f32.mrb[20].mxu1 }
 0x281   : > { %v915_v32 = vmul.f32 1.442695, %v907_v22  ;;  %v917_v33 = vmul.f32 1.442695, %v908_v23  ;;  %v919_v41 = vmul.f32 1.442695, %v909_v24  ;;  %v914_v42 = vsub.f32 %v2639_v47, %v906_v19 }
 0x282   : > { %v921_v44 = vmul.f32 1.442695, %v910_v25  ;;  %v1119_v45 = vmax.f32 %v1117_v29, %v1118_v21  ;;  %v923_v46 = vmul.f32 1.442695, %v911_v26  ;;  %v2682_v37 = vpop.f32.mrb[21].mxu1  ;;  %v1326_v51 = vsel %vm885_vm4, %v2679_v31, -inf }
 0x283   : > { %2184 = vpow2.f32 %v915_v32  ;;  %v925_v36 = vmul.f32 1.442695, %v912_v27  ;;  %v2684_v39 = vpop.f32.mrb[22].mxu1  ;;  %v927_v40 = vmul.f32 1.442695, %v913_v28  ;;  %v1324_v55 = vsel %vm885_vm4, %v2682_v37, -inf }
 0x284   : > { %2186 = vpow2.f32 %v917_v33  ;;  %v1120_v38 = vrot.slane %v1119_v45, 4  ;;  %v2686_v43 = vpop.f32.mrb[23].mxu1  ;;  %v929_v50 = vmul.f32 1.442695, %v914_v42  ;;  %v1327_v62 = vsel %vm885_vm4, %v2684_v39, -inf }
 0x285   : > { %2188 = vpow2.f32 %v919_v41  ;;  %v1325_v0 = vsel %vm885_vm4, %v2686_v43, -inf }
 0x286   : > { %2190 = vpow2.f32 %v921_v44  ;;  %v1121_v48 = vmax.f32 %v1119_v45, %v1120_v38 }
 0x287   : > { %2192 = vpow2.f32 %v923_v46 }
 0x288   : > { %2194 = vpow2.f32 %v925_v36  ;;  %v1122_v47 = vrot.slane %v1121_v48, 2  ;;  %v2688_v49 = vpop.f32.mrb[24].mxu1 }
 0x289   : > { %2196 = vpow2.f32 %v927_v40  ;;  %v1332_v52 = vsel %vm885_vm4, %v2688_v49, -inf  ;;  %v2694_v53 = vpop.f32.mrb[25].mxu1 }
 0x28a   : > { %v1123_v54 = vmax.f32 %v1121_v48, %v1122_v47  ;;  %v1333_v56 = vmax.f32 %v1326_v51, %v1332_v52  ;;  %v1328_v57 = vsel %vm885_vm4, %v2694_v53, -inf  ;;  %v2700_v59 = vpop.f32.mrb[26].mxu1  ;;  %2198 = vpow2.f32 %v929_v50 }
 0x28b   : > { %v1329_v1 = vmax.f32 %v1324_v55, %v1328_v57  ;;  %v1334_v3 = vsel %vm885_vm4, %v2700_v59, -inf  ;;  %v2708_v4 = vpop.f32.mrb[27].mxu1 }
 0x28c   : > { %v1124_v5 = vrot.slane %v1123_v54, 1  ;;  %v1335_v7 = vmax.f32 %v1327_v62, %v1334_v3  ;;  %v1330_v8 = vsel %vm885_vm4, %v2708_v4, -inf }
 0x28d   : > { %v2185_v9 = vpop.eup %2184  ;;  %v1331_v11 = vmax.f32 %v1325_v0, %v1330_v8 }
 0x28e   : > { %v2187_v12 = vpop.eup %2186  ;;  %v931_v13 = vsel %vm885_vm4, %v2185_v9, 0.0  ;;  %v2713_v14 = vmax.f32 %v1123_v54, %v1124_v5  ;;  %v1337_v16 = vmax.f32 %v1333_v56, %v1335_v7 }
 0x28f   : > { %v2189_v17 = vpop.eup %2188  ;;  %v932_v18 = vsel %vm885_vm4, %v2187_v12, 0.0  ;;  %v1336_v19 = vmax.f32 %v1329_v1, %v1331_v11  ;;  %v952_v20 = vpack.c.bf16 %v2187_v12, %v2185_v9 }
 0x290   : > { %v2191_v21 = vpop.eup %2190  ;;  %v933_v22 = vadd.f32 %v932_v18, %v931_v13  ;;  %v1126_v23 = vsub.f32 %v2648_v60, %v2713_v14  ;;  %v1127_v24 = vsub.f32 %v2652_v63, %v2713_v14  ;;  %v2720_v25 = vpop.f32.mrb[28].mxu1  ;;  %v934_v27 = vsel %vm885_vm4, %v2189_v17, 0.0 }
 0x291   : > { %v2722_v26 = vpop.eup %2192  ;;  %v1128_v28 = vsub.f32 %v2646_v58, %v2713_v14  ;;  %v1129_v29 = vsub.f32 %v2650_v61, %v2713_v14  ;;  %v1130_v32 = vsub.f32 %v2660_v6, %v2713_v14  ;;  %2022 = vmatpush3.bf16.msra.mxu0 %v952_v20  ;;  %v2731_v60 = vpop.f32.mrb[29].mxu1  ;;  %v936_v41 = vsel %vm885_vm4, %v2191_v21, 0.0 }
 0x292   : > { %v2195_v33 = vpop.eup %2194  ;;  %v935_v63 = vadd.f32 %v934_v27, %v933_v22  ;;  %v1131_v42 = vsub.f32 %v2672_v15, %v2713_v14  ;;  %v1132_v44 = vsub.f32 %v2654_v2, %v2713_v14  ;;  %v2738_v58 = vpop.f32.mrb[30].mxu1  ;;  %2023 = vmatprep.subr.bf16.mxu0 %v2356_v35  ;;  %v938_v6 = vsel %vm885_vm4, %v2722_v26, 0.0 }
 0x293   : > { %v2741_v61 = vpop.eup %2196  ;;  %v1134_v45 = vmul.f32 1.442695, %v1126_v23  ;;  %v1136_v46 = vmul.f32 1.442695, %v1127_v24  ;;  %v1338_v36 = vmax.f32 %v1336_v19, %v1337_v16  ;;  %v2745_v38 = vpop.f32.mrb[31].mxu1  ;;  %v940_v15 = vsel %vm885_vm4, %v2195_v33, 0.0 }
 0x294   : > { %v937_v40 = vadd.f32 %v936_v41, %v935_v63  ;;  %v1138_v48 = vmul.f32 1.442695, %v1128_v28  ;;  %v1140_v47 = vmul.f32 1.442695, %v1129_v29  ;;  %v942_v2 = vsel %vm885_vm4, %v2741_v61, 0.0  ;;  %v2199_v52 = vpop.eup %2198 }
 0x295   : > { %2200 = vpow2.f32 %v1134_v45  ;;  %v1142_v50 = vmul.f32 1.442695, %v1130_v32  ;;  %v1144_v51 = vmul.f32 1.442695, %v1131_v42  ;;  %v1146_v55 = vmul.f32 1.442695, %v1132_v44 }
 0x296   : > { %v939_v54 = vadd.f32 %v938_v6, %v937_v40  ;;  %2202 = vpow2.f32 %v1136_v46  ;;  %v1339_v56 = vrot.slane %v1338_v36, 4  ;;  %v1544_v57 = vsel %vm885_vm4, %v2720_v25, -inf }
 0x297   : > { %2204 = vpow2.f32 %v1138_v48  ;;  %v1542_v62 = vsel %vm885_vm4, %v2731_v60, -inf  ;;  %v1545_v0 = vsel %vm885_vm4, %v2738_v58, -inf  ;;  %v953_v5 = vpack.c.bf16 %v2191_v21, %v2189_v17 }
 0x298   : > { %v941_v1 = vadd.f32 %v940_v15, %v939_v54  ;;  %2206 = vpow2.f32 %v1140_v47  ;;  %v1340_v3 = vmax.f32 %v1338_v36, %v1339_v56  ;;  %v2756_v7 = vpop.f32.mrb[32].mxu1  ;;  %v954_v8 = vpack.c.bf16 %v2195_v33, %v2722_v26 }
 0x299   : > { %2208 = vpow2.f32 %v1142_v50  ;;  %v1550_v9 = vsel %vm885_vm4, %v2756_v7, -inf  ;;  %v2761_v11 = vpop.f32.mrb[33].mxu1  ;;  %v955_v12 = vpack.c.bf16 %v2199_v52, %v2741_v61  ;;  %2024 = vmatpush3.bf16.msra.mxu0 %v953_v5  ;;  %v1543_v17 = vsel %vm885_vm4, %v2745_v38, -inf }
 0x29a   : > { %v943_v13 = vadd.f32 %v942_v2, %v941_v1  ;;  %2210 = vpow2.f32 %v1144_v51  ;;  %v1341_v16 = vrot.slane %v1340_v3, 2  ;;  %v1551_v18 = vmax.f32 %v1544_v57, %v1550_v9  ;;  %v2764_v19 = vpop.f32.mrb[34].mxu1  ;;  %2025 = vmatprep.subr.bf16.mxu0 %v2356_v35 }
 0x29b   : > { %v1546_v20 = vsel %vm885_vm4, %v2761_v11, -inf  ;;  %v1552_v21 = vsel %vm885_vm4, %v2764_v19, -inf  ;;  %v2773_v22 = vpop.f32.mrb[35].mxu1  ;;  %v1133_v23 = vsub.f32 %v2666_v10, %v2713_v14  ;;  %2212 = vpow2.f32 %v1146_v55 }
 0x29c   : > { %v1342_v24 = vmax.f32 %v1340_v3, %v1341_v16  ;;  %v1547_v26 = vmax.f32 %v1542_v62, %v1546_v20  ;;  %v1553_v27 = vmax.f32 %v1545_v0, %v1552_v21  ;;  %v1548_v28 = vsel %vm885_vm4, %v2773_v22, -inf }
 0x29d   : > { %v1549_v29 = vmax.f32 %v1543_v17, %v1548_v28  ;;  %v1148_v32 = vmul.f32 1.442695, %v1133_v23  ;;  %v944_v33 = vsel %vm885_vm4, %v2199_v52, 0.0  ;;  %2026 = vmatpush3.bf16.msra.mxu0 %v954_v8 }
 0x29e   : > { %v1343_v63 = vrot.slane %v1342_v24, 1  ;;  %v1555_v41 = vmax.f32 %v1551_v18, %v1553_v27  ;;  %v2780_v42 = vadd.f32 %v944_v33, %v943_v13  ;;  %2027 = vmatprep.subr.bf16.mxu0 %v2356_v35 }
 0x29f   : > { %v2201_v44 = vpop.eup %2200  ;;  %v1554_v10 = vmax.f32 %v1547_v26, %v1549_v29  ;;  %2214 = vpow2.f32 %v1148_v32 }
 0x2a0   : > { %v2203_v14 = vpop.eup %2202  ;;  %v1150_v61 = vsel %vm885_vm4, %v2201_v44, 0.0  ;;  %v1344_v6 = vmax.f32 %v1342_v24, %v1343_v63 }
 0x2a1   : > { %v2205_v45 = vpop.eup %2204  ;;  %v1151_v46 = vsel %vm885_vm4, %v2203_v14, 0.0  ;;  %v1556_v36 = vmax.f32 %v1554_v10, %v1555_v41  ;;  %v1171_v40 = vpack.c.bf16 %v2203_v14, %v2201_v44  ;;  %2028 = vmatpush3.bf16.msra.mxu0 %v955_v12  ;;  %v1176_v10 = vrot.slane %v2623_v30, 4 }
 0x2a2   : > { %v2207_v15 = vpop.eup %2206  ;;  %v1152_v48 = vadd.f32 %v1151_v46, %v1150_v61  ;;  %v1345_v47 = vsub.f32 %v2682_v37, %v1344_v6  ;;  %v1346_v2 = vsub.f32 %v2686_v43, %v1344_v6  ;;  %v1153_v51 = vsel %vm885_vm4, %v2205_v45, 0.0  ;;  %2043 = vmatprep.subr.bf16.mxu0 %v2356_v35 }
 0x2a3   : > { %v2209_v50 = vpop.eup %2208  ;;  %v1347_v52 = vsub.f32 %v2679_v31, %v1344_v6  ;;  %v1348_v54 = vsub.f32 %v2684_v39, %v1344_v6  ;;  %v1349_v55 = vsub.f32 %v2694_v53, %v1344_v6  ;;  %v1350_v62 = vsub.f32 %v2708_v4, %v1344_v6 }
 0x2a4   : > { %v2211_v56 = vpop.eup %2210  ;;  %v1154_v57 = vadd.f32 %v1153_v51, %v1152_v48  ;;  %v1351_v37 = vsub.f32 %v2688_v49, %v1344_v6  ;;  %v1155_v43 = vsel %vm885_vm4, %v2207_v15, 0.0  ;;  %v1353_v0 = vmul.f32 1.442695, %v1345_v47  ;;  %2030 = vmatmul.mubr.msk.bf16.vlgmr.msra.gmra.mrb[8].mxu0 %vm885_vm4, %v2623_v30 }
 0x2a5   : > { %v1355_v1 = vmul.f32 1.442695, %v1346_v2  ;;  %v1557_v3 = vrot.slane %v1556_v36, 4  ;;  %v1157_v39 = vsel %vm885_vm4, %v2209_v50, 0.0  ;;  %v1357_v53 = vmul.f32 1.442695, %v1347_v52  ;;  %2044 = vmatpush3.bf16.msra.mxu0 %v1171_v40  ;;  %2051 = vmatprep.mubr.msk.bf16.mxu0 %vm2357_vm3, %v2356_v35  ;;  %v2213_v4 = vpop.eup %2212 }
 0x2a6   : > { %v1156_v31 = vadd.f32 %v1155_v43, %v1154_v57  ;;  %v1359_v5 = vmul.f32 1.442695, %v1348_v54  ;;  %v1159_v49 = vsel %vm885_vm4, %v2211_v56, 0.0  ;;  %2216 = vpow2.f32 %v1353_v0  ;;  %2045 = vmatprep.subr.bf16.mxu0 %v2356_v35 }
 0x2a7   : > { %v1361_v8 = vmul.f32 1.442695, %v1349_v55  ;;  %v1363_v9 = vmul.f32 1.442695, %v1350_v62  ;;  %2218 = vpow2.f32 %v1355_v1  ;;  %v1558_v13 = vmax.f32 %v1556_v36, %v1557_v3 }
 0x2a8   : > { %v1158_v12 = vadd.f32 %v1157_v39, %v1156_v31  ;;  %v1172_v16 = vpack.c.bf16 %v2207_v15, %v2205_v45  ;;  %2220 = vpow2.f32 %v1357_v53  ;;  %v1365_v17 = vmul.f32 1.442695, %v1351_v37 }
 0x2a9   : > { %v2215_v18 = vpop.eup %2214  ;;  %v1173_v20 = vpack.c.bf16 %v2211_v56, %v2209_v50  ;;  %v1352_v21 = vsub.f32 %v2700_v59, %v1344_v6  ;;  %2222 = vpow2.f32 %v1359_v5  ;;  %v1559_v24 = vrot.slane %v1558_v13, 2 }
 0x2aa   : > { %v1160_v23 = vadd.f32 %v1159_v49, %v1158_v12  ;;  %2046 = vmatpush3.bf16.msra.mxu0 %v1172_v16  ;;  %v1174_v26 = vpack.c.bf16 %v2215_v18, %v2213_v4  ;;  %v1161_v27 = vsel %vm885_vm4, %v2213_v4, 0.0  ;;  %2224 = vpow2.f32 %v1361_v8 }
 0x2ab   : > { %2047 = vmatprep.subr.bf16.mxu0 %v2356_v35  ;;  %v1367_v28 = vmul.f32 1.442695, %v1352_v21  ;;  %2226 = vpow2.f32 %v1363_v9  ;;  %v1560_v32 = vmax.f32 %v1558_v13, %v1559_v24  ;;  %v1163_v33 = vsel %vm885_vm4, %v2215_v18, 0.0 }
 0x2ac   : > { %v1162_v29 = vadd.f32 %v1161_v27, %v1160_v23  ;;  %2228 = vpow2.f32 %v1365_v17 }
 0x2ad   : > { %v1561_v63 = vrot.slane %v1560_v32, 1  ;;  %2230 = vpow2.f32 %v1367_v28 }
 0x2ae   : > { %2048 = vmatpush3.bf16.msra.mxu0 %v1173_v20  ;;  %v2806_v59 = vadd.f32 %v1163_v33, %v1162_v29 }
 0x2af   : > { %2049 = vmatprep.subr.bf16.mxu0 %v2356_v35  ;;  %v1562_v41 = vmax.f32 %v1560_v32, %v1561_v63 }
 0x2b0   : > { %v2217_v44 = vpop.eup %2216 }
 0x2b1   : > { %v2219_v14 = vpop.eup %2218  ;;  %v1369_v61 = vsel %vm885_vm4, %v2217_v44, 0.0  ;;  %v1563_v6 = vsub.f32 %v2731_v60, %v1562_v41  ;;  %v1564_v45 = vsub.f32 %v2745_v38, %v1562_v41  ;;  %v1565_v46 = vsub.f32 %v2720_v25, %v1562_v41 }
 0x2b2   : > { %2050 = vmatpush3.bf16.msra.mxu0 %v1174_v26  ;;  %v2221_v36 = vpop.eup %2220  ;;  %v1370_v40 = vsel %vm885_vm4, %v2219_v14, 0.0  ;;  %v1566_v15 = vsub.f32 %v2738_v58, %v1562_v41  ;;  %v1567_v48 = vsub.f32 %v2761_v11, %v1562_v41  ;;  %v1568_v47 = vsub.f32 %v2773_v22, %v1562_v41 }
 0x2b3   : > { %2065 = vmatprep.subr.bf16.mxu0 %v2356_v35  ;;  %v2223_v30 = vpop.eup %2222  ;;  %v1371_v2 = vadd.f32 %v1370_v40, %v1369_v61  ;;  %v1569_v60 = vsub.f32 %v2756_v7, %v1562_v41  ;;  %v1571_v50 = vmul.f32 1.442695, %v1563_v6  ;;  %v1372_v25 = vsel %vm885_vm4, %v2221_v36, 0.0 }
 0x2b4   : > { %v2225_v38 = vpop.eup %2224  ;;  %v1573_v51 = vmul.f32 1.442695, %v1564_v45  ;;  %v1575_v52 = vmul.f32 1.442695, %v1565_v46  ;;  %v1390_v54 = vpack.c.bf16 %v2219_v14, %v2217_v44  ;;  %v1577_v11 = vmul.f32 1.442695, %v1566_v15 }
 0x2b5   : > { %2052 = vmatmul.mubr.msk.bf16.vlgmr.msra.gmra.mrb[12].mxu0 %vm885_vm4, %v1176_v10  ;;  %v2227_v58 = vpop.eup %2226  ;;  %v1373_v55 = vadd.f32 %v1372_v25, %v1371_v2  ;;  %2232 = vpow2.f32 %v1571_v50  ;;  %v1374_v56 = vsel %vm885_vm4, %v2223_v30, 0.0  ;;  %v1579_v7 = vmul.f32 1.442695, %v1567_v48 }
 0x2b6   : > { %2073 = vmatprep.mubr.msk.bf16.mxu0 %vm2357_vm3, %v2356_v35  ;;  %v2229_v22 = vpop.eup %2228  ;;  %2234 = vpow2.f32 %v1573_v51  ;;  %v1581_v57 = vmul.f32 1.442695, %v1568_v47  ;;  %2066 = vmatpush3.bf16.msra.mxu0 %v1390_v54  ;;  %v1376_v43 = vsel %vm885_vm4, %v2225_v38, 0.0  ;;  %v1583_v0 = vmul.f32 1.442695, %v1569_v60 }
 0x2b7   : > { %v2231_v62 = vpop.eup %2230  ;;  %v1375_v37 = vadd.f32 %v1374_v56, %v1373_v55  ;;  %2236 = vpow2.f32 %v1575_v52  ;;  %2067 = vmatprep.subr.bf16.mxu0 %v2356_v35  ;;  %v1391_v1 = vpack.c.bf16 %v2223_v30, %v2221_v36  ;;  %v1392_v3 = vpack.c.bf16 %v2227_v58, %v2225_v38  ;;  %v2182_v30 = vld [vmem:[#allocation3] sm:$0xff]  }
 0x2b8   : > { %2238 = vpow2.f32 %v1577_v11  ;;  %v1393_v31 = vpack.c.bf16 %v2231_v62, %v2229_v22  ;;  %v1570_v53 = vsub.f32 %v2764_v19, %v1562_v41  ;;  %v1378_v5 = vsel %vm885_vm4, %v2227_v58, 0.0  ;;  %2103 = vmatprep.mubr.msk.bf16.mxu1 %vm527_vm0, %v2182_v30 }
 0x2b9   : > { %v1377_v39 = vadd.f32 %v1376_v43, %v1375_v37  ;;  %2240 = vpow2.f32 %v1579_v7  ;;  %v1380_v8 = vsel %vm885_vm4, %v2229_v22, 0.0  ;;  %v1382_v12 = vsel %vm885_vm4, %v2231_v62, 0.0 }
 0x2ba   : > { %2242 = vpow2.f32 %v1581_v57  ;;  %2068 = vmatpush3.bf16.msra.mxu0 %v1391_v1  ;;  %v1585_v49 = vmul.f32 1.442695, %v1570_v53  ;;  %v1613_v47 = vrot.slane %v2627_v34, 4  ;;  %v946_v2 = vrot.slane %v2780_v42, 4 }
 0x2bb   : > { %v1379_v4 = vadd.f32 %v1378_v5, %v1377_v39  ;;  %2244 = vpow2.f32 %v1583_v0  ;;  %2069 = vmatprep.subr.bf16.mxu0 %v2356_v35  ;;  %v1165_v51 = vrot.slane %v2806_v59, 4 }
 0x2bc   : > { %2246 = vpow2.f32 %v1585_v49  ;;  %v947_v60 = vadd.f32 %v946_v2, %v2780_v42 }
 0x2bd   : > { %v1381_v9 = vadd.f32 %v1380_v8, %v1379_v4 }
 0x2be   : > { %2070 = vmatpush3.bf16.msra.mxu0 %v1392_v3  ;;  %v948_v50 = vrot.slane %v947_v60, 2 }
 0x2bf   : > { %v2233_v13 = vpop.eup %2232  ;;  %2071 = vmatprep.subr.bf16.mxu0 %v2356_v35  ;;  %v2833_v19 = vadd.f32 %v1382_v12, %v1381_v9 }
 0x2c0   : > { %v2235_v16 = vpop.eup %2234  ;;  %v1587_v18 = vsel %vm885_vm4, %v2233_v13, 0.0  ;;  %v949_v38 = vadd.f32 %v948_v50, %v947_v60 }
 0x2c1   : > { %v2237_v17 = vpop.eup %2236  ;;  %v1588_v20 = vsel %vm885_vm4, %v2235_v16, 0.0  ;;  %v1608_v21 = vpack.c.bf16 %v2235_v16, %v2233_v13  ;;  %v1384_v55 = vrot.slane %v2833_v19, 4 }
 0x2c2   : > { %v2239_v23 = vpop.eup %2238  ;;  %v1589_v24 = vadd.f32 %v1588_v20, %v1587_v18  ;;  %2072 = vmatpush3.bf16.msra.mxu0 %v1393_v31  ;;  %v1590_v27 = vsel %vm885_vm4, %v2237_v17, 0.0  ;;  %v950_v25 = vrot.slane %v949_v38, 1 }
 0x2c3   : > { %v2241_v26 = vpop.eup %2240  ;;  %2087 = vmatprep.subr.bf16.mxu0 %v2356_v35  ;;  %v1609_v28 = vpack.c.bf16 %v2239_v23, %v2237_v17  ;;  %v1592_v63 = vsel %vm885_vm4, %v2239_v23, 0.0  ;;  %v1385_v43 = vadd.f32 %v1384_v55, %v2833_v19 }
 0x2c4   : > { %v2243_v29 = vpop.eup %2242  ;;  %v1591_v32 = vadd.f32 %v1590_v27, %v1589_v24  ;;  %v1594_v14 = vsel %vm885_vm4, %v2241_v26, 0.0  ;;  %v951_v52 = vadd.f32 %v950_v25, %v949_v38 }
 0x2c5   : > { %v2245_v33 = vpop.eup %2244  ;;  %2074 = vmatmul.mubr.msk.bf16.vlgmr.msra.gmra.mrb[16].mxu0 %vm885_vm4, %v2627_v34  ;;  %v1610_v41 = vpack.c.bf16 %v2243_v29, %v2241_v26  ;;  %v1596_v45 = vsel %vm885_vm4, %v2243_v29, 0.0 }
 0x2c6   : > { %v1593_v44 = vadd.f32 %v1592_v63, %v1591_v32  ;;  %2088 = vmatpush3.bf16.msra.mxu0 %v1608_v21  ;;  %2095 = vmatprep.mubr.msk.bf16.mxu0 %vm2357_vm3, %v2356_v35  ;;  %v2247_v10 = vpop.eup %2246  ;;  %v1598_v36 = vsel %vm885_vm4, %v2245_v33, 0.0  ;;  %2248 = vrcp.f32 %v951_v52 }
 0x2c7   : > { %2089 = vmatprep.subr.bf16.mxu0 %v2356_v35  ;;  %v1611_v6 = vpack.c.bf16 %v2247_v10, %v2245_v33  ;;  %v1600_v15 = vsel %vm885_vm4, %v2247_v10, 0.0 }
 0x2c8   : > { %v1595_v61 = vadd.f32 %v1594_v14, %v1593_v44 }
 0x2ca   : > { %v1597_v46 = vadd.f32 %v1596_v45, %v1595_v61  ;;  %2090 = vmatpush3.bf16.msra.mxu0 %v1609_v28  ;;  %v2183_v45 = vld [vmem:[#allocation3 + $0x8] sm:$0xff]  }
 0x2cb   : > { %2091 = vmatprep.subr.bf16.mxu0 %v2356_v35 }
 0x2cc   : > { %v1599_v40 = vadd.f32 %v1598_v36, %v1597_v46  ;;  %v1669_v46 = vpop.permute.xlu0 %1668  ;;  %v1674_v36 = vpop.permute.xlu1 %1673 }
 0x2ce   : > { %2092 = vmatpush3.bf16.msra.mxu0 %v1610_v41  ;;  %v1601_v48 = vadd.f32 %v1600_v15, %v1599_v40 }
 0x2cf   : > { %2093 = vmatprep.subr.bf16.mxu0 %v2356_v35  ;;  %v1166_v35 = vadd.f32 %v1165_v51, %v2806_v59  ;;  %v1386_v59 = vrot.slane %v1385_v43, 2 }
 0x2d0   : > { %v2249_v11 = vpop.eup %2248  ;;  %v1602_v3 = vrot.slane %v1601_v48, 4  ;;  %v1679_v40 = vpop.permute.xlu0 %1678 }
 0x2d1   : > { %v1167_v54 = vrot.slane %v1166_v35, 2  ;;  %v1387_v0 = vadd.f32 %v1386_v59, %v1385_v43  ;;  %v1684_v30 = vpop.permute.xlu1 %1683 }
 0x2d2   : > { %2094 = vmatpush3.bf16.msra.mxu0 %v1611_v6  ;;  %v1603_v12 = vadd.f32 %v1602_v3, %v1601_v48 }
 0x2d3   : > { %v1168_v34 = vadd.f32 %v1167_v54, %v1166_v35  ;;  %v1388_v1 = vrot.slane %v1387_v0, 1 }
 0x2d4   : > { %v1604_v19 = vrot.slane %v1603_v12, 2 }
 0x2d5   : > { %2096 = vmatmul.mubr.msk.bf16.vlgmr.msra.gmra.mrb[20].mxu0 %vm885_vm4, %v1613_v47  ;;  %v1169_v58 = vrot.slane %v1168_v34, 1  ;;  %v1389_v9 = vadd.f32 %v1388_v1, %v1387_v0 }
 0x2d6   : > { %v1605_v16 = vadd.f32 %v1604_v19, %v1603_v12 }
 0x2d7   : > { %v1170_v57 = vadd.f32 %v1169_v58, %v1168_v34 }
 0x2d8   : > { %v1606_v17 = vrot.slane %v1605_v16, 1 }
 0x2d9   : > { %2250 = vrcp.f32 %v1170_v57 }
 0x2da   : > { %2252 = vrcp.f32 %v1389_v9  ;;  %v1607_v27 = vadd.f32 %v1606_v17, %v1605_v16 }
 0x2dc   : > { %2254 = vrcp.f32 %v1607_v27 }
 0x2e3   : > { %v2251_v31 = vpop.eup %2250 }
 0x2e4   : > { %v2253_v20 = vpop.eup %2252 }
 0x2e6   : > { %v2255_v32 = vpop.eup %2254 }
 0x377   : > { %v993_v22 = vpop.f32.mrb[8].mxu0 }
 0x378   : > { %v1000_v56 = vmul.f32 %v2249_v11, %v993_v22  ;;  %v2031_v7 = vpop.f32.mrb[9].mxu0 }
 0x379   : > { %v996_v42 = vpop.f32.mrb[10].mxu0 }
 0x37a   : > { %v1001_v62 = vpack.c.bf16 %v1000_v56, %v1000_v56  ;;  %v2032_v37 = vpop.f32.mrb[11].mxu0 }
 0x37c   : > { %1003 = vst.msk [vmem:[#allocation2] sm:$0xf] %vm1002_vm5, %v1001_v62 }
 0x388   : > { %v1214_v39 = vpop.f32.mrb[12].mxu0 }
 0x389   : > { %v1221_v53 = vmul.f32 %v2251_v31, %v1214_v39  ;;  %v2053_v5 = vpop.f32.mrb[13].mxu0 }
 0x38a   : > { %v1217_v4 = vpop.f32.mrb[14].mxu0 }
 0x38b   : > { %v1222_v49 = vpack.c.bf16 %v1221_v53, %v1221_v53  ;;  %v2054_v8 = vpop.f32.mrb[15].mxu0 }
 0x38d   : > { %v1224_v13 = vrot.slane %v1222_v49, 4 }
 0x38f   : > { %1227 = vst.msk [vmem:[#allocation2] sm:$0xf0] %vm1226_vm6, %v1224_v13 }
 0x396   : > { %v1664_v18 = vld [vmem:[#allocation2] sm:$0xff] }
 0x397   : > { %2099 = vmatprep.subr.bf16.mxu1 %v1664_v18 }
 0x398   : > { %2100 = vmatpush3.bf16.msra.mxu1 %v1664_v18  ;;  %v1431_v21 = vpop.f32.mrb[16].mxu0 }
 0x399   : > { %v1438_v23 = vmul.f32 %v2253_v20, %v1431_v21  ;;  %v2075_v24 = vpop.f32.mrb[17].mxu0 }
 0x39a   : > { %v1434_v26 = vpop.f32.mrb[18].mxu0 }
 0x39b   : > { %v1439_v28 = vpack.c.bf16 %v1438_v23, %v1438_v23  ;;  %v2076_v29 = vpop.f32.mrb[19].mxu0 }
 0x39d   : > { %1440 = vst.msk [vmem:[#allocation2 + $0x8] sm:$0xf] %vm1002_vm5, %v1439_v28 }
 0x3a8   : > { %v1651_v33 = vpop.f32.mrb[20].mxu0 }
 0x3a9   : > { %v1658_v63 = vmul.f32 %v2255_v32, %v1651_v33  ;;  %v2097_v41 = vpop.f32.mrb[21].mxu0 }
 0x3aa   : > { %v1654_v44 = vpop.f32.mrb[22].mxu0 }
 0x3ab   : > { %v1659_v10 = vpack.c.bf16 %v1658_v63, %v1658_v63  ;;  %v2098_v14 = vpop.f32.mrb[23].mxu0 }
 0x3ad   : > { %v1661_v61 = vrot.slane %v1659_v10, 4 }
 0x3af   : > { %1663 = vst.msk [vmem:[#allocation2 + $0x8] sm:$0xf0] %vm1226_vm6, %v1661_v61 }
 0x3b6   : > { %v1665_v6 = vld [vmem:[#allocation2 + $0x8] sm:$0xff] }
 0x3b7   : > { %2101 = vmatprep.subr.bf16.mxu1 %v1665_v6 }
 0x3b8   : > { %2102 = vmatpush3.bf16.msra.mxu1 %v1665_v6 }
 0x3bb   : > { %2104 = vmatmul.mubr.msk.bf16.vlgmr.msra.gmra.mrb[36].mxu1 %vm527_vm0, %v2183_v45 }
 0x48e   : > { %v2105_v15 = vpop.f32.mrb[36].mxu1 }
 0x48f   : > { %v1745_v48 = vadd.f32 %v2105_v15, %v1679_v40  ;;  %v1736_v47 = vpop.f32.mrb[37].mxu1 }
 0x490   : > { %v1737_v2 = vadd.f32 %v1736_v47, %v1669_v46  ;;  %v2106_v60 = vpop.f32.mrb[38].mxu1 }
 0x491   : > { %1753 = vst.msk [vmem:[%s424_s0 + $0x10] sm:$0xff] %vm885_vm4, %v1745_v48  ;;  %v1748_v50 = vadd.f32 %v2106_v60, %v1684_v30  ;;  %v1739_v38 = vpop.f32.mrb[39].mxu1 }
 0x492   : > { %1751 = vst.msk [vmem:[%s424_s0] sm:$0xff] %vm885_vm4, %v1737_v2  ;;  %v1740_v25 = vadd.f32 %v1739_v38, %v1674_v36 }
 0x493   : > { %1754 = vst.msk [vmem:[%s424_s0 + $0x18] sm:$0xff] %vm885_vm4, %v1748_v50 }
 0x494   : > { %1752 = vst.msk [vmem:[%s424_s0 + $0x8] sm:$0xff] %vm885_vm4, %v1740_v25 }
 0x495   : > { %2297 = shalt.err (!%p2294_p7)
}
 0x496   : > { %s2298_s22 = scalar_lea.hbm %s2874_s21, 512  ;;  %s2302_s16 = scalar_lea.hbm %s2930_s11, 1024 }
 0x497   : > { %p2299_p8 = scmp.ne.s32.totalorder %s2874_s21, %s2298_s22  ;;  %p2303_p1 = scmp.lt.u32.totalorder %s2874_s21, %s2930_s11 }
 0x498   : > { %p2304_p0 = scmp.lt.u32.totalorder %s2302_s16, %s2298_s22  ;;  %p2306_p6 = scmp.lt.u32.totalorder %s2298_s22, %s2874_s21 }
 0x499   : > { %p2300_p11 = pnand %p2299_p8, %p2944_p9 }
 0x49a   : > { %p2305_p5 = por %p2304_p0, %p2303_p1 }
 0x49b   : > { %p2301_p13 = pneg %p2300_p11 }
 0x49c   : > { %p2307_p10 = por %p2306_p6, %p2305_p5 }
 0x49e   : > { %p2308_p12 = pnand %p2307_p10, %p2301_p13 }
 0x4a0   : > { %2311 = shalt.err (!%p2308_p12)
}
 0x4a1   : > { %s2359_s30 = smov 128   ;;  %s2360_s14 = smov 8  }
 0x4a2   : > { %2115 = dma.vmem_to_hbm [thread:$0]  (%p2944_p9), %s2868_s26, 512, %s2874_s21, %s2878_s29, %s2359_s30, %s2359_s30, %s2360_s14  }
 0x4a3 PF: > { %p2127_p2 = scmp.ge.s32.totalorder %s2350_s20, 2  ;;  %s1784_s13 = sand.u32 1, %s2338_s17  }
 0x4a4   : > { %p2945_p3 = scmp.ne.s32.totalorder %s2937_s28, 0  ;;  %s1785_s15 = scalar_lea.sflag [#allocation5], %s1784_s13 }
 0x4a6   : > { %p2122_p4 = pnand %p2127_p2, %p2945_p3 }
 0x4a8   : > { %2333 = dma.done.wait (!%p2122_p4), %s1785_s15, 512  }
 0x4a9   : > { %2335 = vsyncadd (!%p2122_p4), %s1785_s15, 4294966784  ;;  %s2946_s22 = sld [smem:[#allocation9_spill]]  ;;  %p22_p7 = scmp.ge.s32.totalorder %s2446_s23, 4  }
 0x4aa   : > { %s2947_s17 = smov %s2342_s18  ;;  %s2948_s18 = smov %s2346_s19 }
 0x4ab   : > { %s2950_s20 = smov %s2446_s23  ;;  %24 = sbr.rel (!%p22_p7) target bundleno = 6 (0x6), region = 110 }
 0x4af   : > { %s2949_s19 = smov %s2946_s22 }
 0x4b2   :  { %1790 = vsyncpa [#allocation4], 1 }
 0x4b3   :  { %1792 = vsyncpa [#allocation4 + $0x1], 1 }
 0x4b4   :  { %1793 = vsyncpa [#allocation5], 1 }
 0x4b5   :  { %1795 = vsyncpa [#allocation5 + $0x1], 1 }

// kernel: tpu_custom_call.1
= control target key start
LH: loop header
LB: loop body
LE: loop exit
PB: predicated region body
PF: predicated region fallthrough
CT: control target
= control target key end

     0   :  { %s2919_s0 = inlined_call_operand.vmem [shape: bf16[2,32,64], index: 0, kind: input, shape index: {}]   ;;  %s2920_s1 = inlined_call_operand.vmem [shape: bf16[2,32,64], index: 1, kind: input, shape index: {}]   ;;  %s2921_s2 = inlined_call_operand.vmem [shape: bf16[2,32,64], index: 2, kind: input, shape index: {}]   ;;  %s2922_s3 = inlined_call_operand.vmem [shape: bf16[32,32], index: 3, kind: input, shape index: {}]   ;;  %s2923_s4 = inlined_call_operand.vmem [shape: bf16[32,32], index: 4, kind: input, shape index: {}]   ;;  %s2924_s5 = inlined_call_operand.vmem [shape: bf16[32,32], index: 5, kind: input, shape index: {}]   ;;  %s2925_s6 = inlined_call_operand.hbm [shape: bf16[32,32], index: 6, kind: input, shape index: {}]   ;;  %s2926_s7 = inlined_call_operand.vmem [shape: f32[32,1], index: 7, kind: input, shape index: {}]   ;;  %s2927_s8 = inlined_call_operand.vmem [shape: f32[32,1], index: 8, kind: input, shape index: {}]   ;;  %s2928_s9 = inlined_call_operand.vmem [shape: f32[32,1], index: 9, kind: input, shape index: {}]   ;;  %s2929_s10 = inlined_call_operand.vmem [shape: f32[32,1], index: 10, kind: input, shape index: {}]   ;;  %s2930_s11 = inlined_call_operand.hbm [shape: f32[2,32,64], index: 11, kind: output, shape index: {}]  }
   0x1   :  { %2934 = sst [smem:[#allocation10_spill]] %s2919_s0 }
   0x2   :  { %16 = vsyncpa [#allocation4], 0 }
   0x3   :  { %17 = vsyncpa [#allocation5], 0 }
   0x4   :  { %19 = vsyncpa [#allocation5 + $0x1], 0  ;;  %s2421_s17 = smov 0   ;;  %s2423_s18 = smov 0  }
   0x5   :  { %s2425_s19 = smov 0   ;;  %s2427_s20 = smov 0  }
   0x6 LB: > { %s2442_s21 = sadd.s32 4294967295, %s2350_s20   ;;  %s1867_s22 = sadd.s32 4294967294, %s2350_s20   ;;  %s2350_s20 = sphi %s2427_s20, %s2950_s20   ;;  %s2346_s19 = sphi %s2425_s19, %s2949_s19   ;;  %s2342_s18 = sphi %s2423_s18, %s2948_s18   ;;  %s2338_s17 = sphi %s2421_s17, %s2947_s17  }
   0x7   : > { %s2446_s23 = sadd.s32 1, %s2350_s20   ;;  %s278_s24 = sadd.s32 1, %s2346_s19 }
   0x8   : > { %s275_s25 = ssub.s32 %s2350_s20, %s2446_s23  ;;  %p288_p0 = scmp.ne.s32.totalorder %s2346_s19, %s2342_s18 }
   0x9   : > { %p276_p1 = scmp.eq.s32.totalorder %s275_s25, 0  ;;  %p289_p2 = scmp.eq.s32.totalorder %s2442_s21, 1 }
   0xa   : > { %p294_p3 = scmp.ne.s32.totalorder %s2342_s18, %s2338_s17  ;;  %p295_p4 = scmp.eq.s32.totalorder %s1867_s22, 1 }
   0xb   : > { %s2457_s26 = scalar_select %p276_p1, %s2346_s19, %s278_s24  }
   0xc   : > { %p2459_p5 = por %p289_p2, %p288_p0  ;;  %p2463_p6 = por %p295_p4, %p294_p3 }
   0xd   : > { %2935 = sst [smem:[#allocation9_spill]] %s2457_s26  ;;  %p1868_p7 = scmp.ge.s32.totalorder %s2350_s20, 1 }
   0xe   : > { %s2936_s27 = scalar_select %p2459_p5, 1, 0 }
   0xf   : > { %s2937_s28 = scalar_select %p2463_p6, 1, 0 }
  0x10   : > { %p302_p8 = scmp.lt.s32.totalorder %s2350_s20, 3  ;;  %p2931_p9 = scmp.eq.s32.totalorder %s2442_s21, 0 }
  0x11   : > { %s2352_s30 = smov [#allocation3]   ;;  %s2256_s16 = scalar_lea.hbm %s2925_s6, 256 }
  0x12   : > { %p2470_p10 = pnand %p1868_p7, %p302_p8  ;;  %s323_s12 = sshll.u32 %s2352_s30, 4  ;;  %s324_s12 = int_to_ptr.vmem [resolvable:$true] %s323_s12 }
  0x13   : > { %p2257_p13 = scmp.ne.s32.totalorder %s2925_s6, %s2256_s16  ;;  %p2263_p3 = scmp.lt.u32.totalorder %s2256_s16, %s2925_s6 }
  0x14   : > { %s2938_s29 = scalar_select %p2470_p10, 1, 0 }
  0x15   : > { %p2117_p11 = pneg %p2470_p10 }
  0x17   : > { %p2478_p12 = pnand %p2931_p9, %p2117_p11 }
  0x19   : > { %p2258_p0 = pneg %p2478_p12 }
  0x1b   : > { %p2259_p1 = pnand %p2258_p0, %p2257_p13 }
  0x1d   : > { %p2260_p2 = pneg %p2259_p1 }
  0x1f   : > { %p2265_p4 = pnand %p2263_p3, %p2260_p2 }
  0x21   : > { %2268 = shalt.err (!%p2265_p4)
}
  0x22   : > { %s2269_s26 = scalar_lea.vmem %s324_s12, 256  ;;  %p2277_p9 = scmp.lt.s32.totalorder %s324_s12, %s324_s12 }
  0x23   : > { %p2270_p7 = scmp.ne.s32.totalorder %s324_s12, %s2269_s26  ;;  %p2278_p6 = scmp.lt.s32.totalorder %s2269_s26, %s2269_s26 }
  0x25   : > { %p2272_p8 = pnand %p2270_p7, %p2258_p0  ;;  %p2279_p5 = por %p2278_p6, %p2277_p9 }
  0x27   : > { %p2273_p11 = pneg %p2272_p8 }
  0x29   : > { %p2280_p10 = pnand %p2279_p5, %p2273_p11 }
  0x2b   : > { %2283 = shalt.err (!%p2280_p10)
}
  0x2c   : > { %s2353_s14 = smov 64   ;;  %s2354_s15 = smov 4  }
  0x2d   : > { %2120 = dma.hbm_to_vmem [thread:$0]  (!%p2478_p12), %s2925_s6, 256, %s324_s12, [#allocation4], %s2353_s14, %s2353_s14, %s2354_s15  }
  0x2e   : > { %p2940_p13 = scmp.ne.s32.totalorder %s2938_s29, 0 }
  0x2f   : > { %p2941_p1 = scmp.eq.s32.totalorder (!%p2940_p13), %s2442_s21, 0 }
  0x30   : > { %375 = sbr.rel (%p2940_p13) target bundleno = 1187 (0x4a3), region = 64 }
  0x37   : > { %2329 = dma.done.wait (%p2941_p1), [#allocation4], 256   ;;  %p2942_p0 = pmov %p2941_p1 }
  0x38   : > { %p425_p5 = scmp.lt.s32.totalorder %s2442_s21, 1  ;;  %v2355_v0 = vmov 0   ;;  %s2943_s0 = sld [smem:[#allocation10_spill]]  ;;  %vm527_vm0 = vcmask 261120   ;;  %v2174_v5 = vld [vmem:[%s2922_s3] sm:$0xff]   ;;  %v2176_v7 = vld [vmem:[%s2922_s3 + $0x8] sm:$0xff]  }
  0x39   : > { %2331 = vsyncadd (%p2942_p0), [#allocation4], 4294967040  ;;  %2168 = vset.pattern.permute.xlu0 %v2355_v0  ;;  %2169 = vset.pattern.permute.xlu1 %v2355_v0  ;;  %v2175_v6 = vld [vmem:[%s2923_s4] sm:$0xff]   ;;  %v2177_v8 = vld [vmem:[%s2923_s4 + $0x8] sm:$0xff]   ;;  %vm816_vm1 = vcmask 1043456   ;;  %vm803_vm2 = vcmask 64512  }
  0x3a   : > { %s426_s26 = scalar_select %p425_p5, %s2442_s21, 1  ;;  %1991 = vmatprep.mubr.msk.bf16.mxu0 %vm527_vm0, %v2174_v5  ;;  %1999 = vmatprep.mubr.msk.bf16.mxu1 %vm527_vm0, %v2175_v6  ;;  %v461_v9 = vld [vmem:[%s2927_s8] sm:$0xff]  ;;  %v463_v10 = vld [vmem:[%s2927_s8 + $0x10] sm:$0xff]  ;;  %v462_v11 = vld [vmem:[%s2927_s8 + $0x8] sm:$0xff]  ;;  %vm2357_vm3 = vmmov 0   ;;  %vm885_vm4 = vcmask 523264  }
  0x3b   : > { %589 = vperm.xlu0 %2168, %v461_v9   ;;  %599 = vperm.xlu1 %2169, %v463_v10   ;;  %v464_v12 = vld [vmem:[%s2927_s8 + $0x18] sm:$0xff]  ;;  %v457_v14 = vld [vmem:[%s2926_s7] sm:$0xff]  ;;  %v458_v17 = vld [vmem:[%s2926_s7 + $0x8] sm:$0xff]  ;;  %vm1002_vm5 = vcmask 519168   ;;  %vm1226_vm6 = vcmask 523268   ;;  %s422_s22 = sand.u32 1, %s2342_s18  }
  0x3c   : > { %s1927_s13 = sshll.u32 %s426_s26, 4  ;;  %v2180_v16 = vld [vmem:[%s2924_s5] sm:$0xff]   ;;  %v459_v18 = vld [vmem:[%s2926_s7 + $0x10] sm:$0xff]  ;;  %v460_v19 = vld [vmem:[%s2926_s7 + $0x18] sm:$0xff]  ;;  %s1873_s24 = sshll.u32 %s422_s22, 5 }
  0x3d   : > { %s434_s14 = scalar_lea.vmem %s2920_s1, %s1927_s13  ;;  %s439_s16 = scalar_lea.vmem %s2921_s2, %s1927_s13  ;;  %v2181_v20 = vld [vmem:[%s2924_s5 + $0x8] sm:$0xff]   ;;  %v465_v62 = vld [vmem:[%s2928_s9] sm:$0xff]  ;;  %v468_v63 = vld [vmem:[%s2928_s9 + $0x18] sm:$0xff] }
  0x3e   : > { %s429_s12 = scalar_lea.vmem %s2943_s0, %s1927_s13  ;;  %v2171_v2 = vld [vmem:[%s434_s14] sm:$0xff]   ;;  %v2173_v4 = vld [vmem:[%s434_s14 + $0x8] sm:$0xff]   ;;  %v467_v0 = vld [vmem:[%s2928_s9 + $0x10] sm:$0xff]  ;;  %s424_s0 = scalar_lea.vmem [#allocation6], %s1873_s24 }
  0x3f   : > { %v2170_v1 = vld [vmem:[%s429_s12] sm:$0xff]   ;;  %v2172_v3 = vld [vmem:[%s429_s12 + $0x8] sm:$0xff]   ;;  %1995 = vmatprep.subr.bf16.mxu1 %v2171_v2  ;;  %594 = vperm.xlu0 %2168, %v462_v11   ;;  %s1769_s26 = sshll.u32 %s424_s0, 4  ;;  %s2878_s29 = scalar_lea.sflag [#allocation5], %s422_s22  ;;  %s2868_s26 = int_to_ptr.vmem [resolvable:$true] %s1769_s26 }
  0x40   : > { %1987 = vmatprep.subr.bf16.mxu0 %v2170_v1  ;;  %1996 = vmatpush3.bf16.msra.mxu1 %v2171_v2  ;;  %v2178_v13 = vld [vmem:[%s439_s16] sm:$0xff]   ;;  %v2179_v15 = vld [vmem:[%s439_s16 + $0x8] sm:$0xff]   ;;  %s1930_s16 = sshll.u32 %s2442_s21, 9  ;;  %s2284_s30 = scalar_lea.vmem %s2868_s26, 512 }
  0x41   : > { %1988 = vmatpush3.bf16.msra.mxu0 %v2170_v1  ;;  %1997 = vmatprep.subr.bf16.mxu1 %v2173_v4  ;;  %v466_v59 = vld [vmem:[%s2928_s9 + $0x8] sm:$0xff]  ;;  %v469_v2 = vld [vmem:[%s2929_s10] sm:$0xff]  ;;  %s2874_s21 = scalar_lea.hbm %s2930_s11, %s1930_s16  ;;  %p2285_p6 = scmp.ne.s32.totalorder %s2868_s26, %s2284_s30 }
  0x42   : > { %1989 = vmatprep.subr.bf16.mxu0 %v2172_v3  ;;  %604 = vperm.xlu1 %2169, %v464_v12   ;;  %v470_v1 = vld [vmem:[%s2929_s10 + $0x8] sm:$0xff]  ;;  %p2944_p9 = scmp.ne.s32.totalorder %s2936_s27, 0  ;;  %s2358_s14 = smov [#allocation6]  }
  0x43   : > { %487 = vperm.xlu0 %2168, %v457_v14   ;;  %s2288_s13 = sshll.u32 %s2358_s14, 4  ;;  %s2289_s13 = int_to_ptr.vmem [resolvable:$false] %s2288_s13 }
  0x44   : > { %1998 = vmatpush3.bf16.msra.mxu1 %v2173_v4  ;;  %v471_v4 = vld [vmem:[%s2929_s10 + $0x10] sm:$0xff]  ;;  %p2286_p10 = pnand %p2285_p6, %p2944_p9  ;;  %s2290_s15 = scalar_lea.vmem %s2289_s13, 1024 }
  0x45   : > { %1990 = vmatpush3.bf16.msra.mxu0 %v2172_v3  ;;  %v472_v3 = vld [vmem:[%s2929_s10 + $0x18] sm:$0xff]  ;;  %p2291_p2 = scmp.lt.s32.totalorder %s2868_s26, %s2289_s13  ;;  %p2292_p3 = scmp.lt.s32.totalorder %s2290_s15, %s2284_s30 }
  0x46   : > { %2003 = vmatprep.subr.bf16.mxu0 %v2178_v13  ;;  %492 = vperm.xlu1 %2169, %v458_v17   ;;  %p2287_p12 = pneg %p2286_p10 }
  0x47   : > { %2000 = vmatmul.mubr.msk.bf16.vlgmr.msra.gmra.mrb[0].mxu1 %vm527_vm0, %v2177_v8  ;;  %497 = vperm.xlu0 %2168, %v459_v18   ;;  %p2293_p4 = por %p2292_p3, %p2291_p2 }
  0x48   : > { %1992 = vmatmul.mubr.msk.bf16.vlgmr.msra.gmra.mrb[0].mxu0 %vm527_vm0, %v2176_v7 }
  0x49   : > { %2004 = vmatpush3.bf16.msra.mxu0 %v2178_v13  ;;  %2007 = vmatprep.mubr.msk.bf16.mxu0 %vm527_vm0, %v2180_v16  ;;  %p2294_p7 = pnand %p2293_p4, %p2287_p12 }
  0x4a   : > { %2005 = vmatprep.subr.bf16.mxu0 %v2179_v15  ;;  %502 = vperm.xlu1 %2169, %v460_v19  }
  0x4d   : > { %2006 = vmatpush3.bf16.msra.mxu0 %v2179_v15 }
  0x50   : > { %2008 = vmatmul.mubr.msk.bf16.vlgmr.msra.gmra.mrb[4].mxu0 %vm527_vm0, %v2181_v20 }
  0xba   : > { %v590_v21 = vpop.permute.xlu0 %589  ;;  %v600_v22 = vpop.permute.xlu1 %599 }
  0xbe   : > { %v595_v23 = vpop.permute.xlu0 %594 }
  0xc1   : > { %v605_v24 = vpop.permute.xlu1 %604 }
  0xc2   : > { %v488_v25 = vpop.permute.xlu0 %487 }
  0xc5   : > { %v493_v26 = vpop.permute.xlu1 %492 }
  0xc6   : > { %v498_v27 = vpop.permute.xlu0 %497 }
  0xc9   : > { %v503_v29 = vpop.permute.xlu1 %502 }
 0x11a   : > { %v2001_v31 = vpop.f32.mrb[0].mxu1 }
 0x11b   : > { %v1993_v28 = vpop.f32.mrb[0].mxu0  ;;  %v669_v34 = vpop.f32.mrb[1].mxu1  ;;  %v678_v39 = vadd.f32 %v2001_v31, %v600_v22 }
 0x11c   : > { %v577_v30 = vadd.f32 %v1993_v28, %v498_v27  ;;  %v568_v32 = vpop.f32.mrb[1].mxu0  ;;  %v2002_v37 = vpop.f32.mrb[2].mxu1  ;;  %v670_v44 = vadd.f32 %v669_v34, %v590_v21 }
 0x11d   : > { %v569_v33 = vadd.f32 %v568_v32, %v488_v25  ;;  %v1994_v35 = vpop.f32.mrb[2].mxu0  ;;  %v681_v40 = vadd.f32 %v2002_v37, %v605_v24  ;;  %v672_v42 = vpop.f32.mrb[3].mxu1 }
 0x11e   : > { %v580_v36 = vadd.f32 %v1994_v35, %v503_v29  ;;  %v571_v38 = vpop.f32.mrb[3].mxu0  ;;  %v585_v43 = vmul.f32 0.35355338, %v577_v30  ;;  %v673_v46 = vadd.f32 %v672_v42, %v595_v23  ;;  %v2356_v35 = vmov 0.0  }
 0x11f   : > { %v572_v41 = vadd.f32 %v571_v38, %v493_v26  ;;  %v583_v47 = vmul.f32 0.35355338, %v569_v33  ;;  %v784_v48 = vpack.c.bf16 %v681_v40, %v678_v39  ;;  %2021 = vmatprep.subr.bf16.mxu0 %v2356_v35  ;;  %2029 = vmatprep.mubr.msk.bf16.mxu0 %vm2357_vm3, %v2356_v35 }
 0x120   : > { %v586_v45 = vmul.f32 0.35355338, %v580_v36  ;;  %v783_v51 = vpack.c.bf16 %v673_v46, %v670_v44 }
 0x121   : > { %v584_v49 = vmul.f32 0.35355338, %v572_v41  ;;  %v1442_v56 = vrot.slane %v784_v48, 4 }
 0x122   : > { %v2563_v50 = vpack.c.bf16 %v586_v45, %v585_v43  ;;  %787 = vxpose.xlu0.c.b16.start.end [1/1] (short) (narrow) %v783_v51, 64  ;;  %v1005_v53 = vrot.slane %v783_v51, 4 }
 0x123   : > { %v781_v52 = vpack.c.bf16 %v584_v49, %v583_v47  ;;  %v2568_v57 = vpop.f32.mrb[4].mxu0 }
 0x124   : > { %1007 = vxpose.xlu1.c.b16.start.end [1/1] (short) (narrow) %v1005_v53, 64  ;;  %v2570_v58 = vpop.f32.mrb[5].mxu0  ;;  %v1257_v13 = vsel %vm816_vm1, %v2563_v50, 0  ;;  %v1461_v14 = vrot.slane %v2563_v50, 4 }
 0x125   : > { %2107 = vmatprep.subr.msk.bf16.mxu1 %vm816_vm1, %v781_v52  ;;  %v818_v54 = vsel %vm816_vm1, %v781_v52, 0  ;;  %v1024_v55 = vrot.slane %v781_v52, 4  ;;  %v2575_v60 = vpop.f32.mrb[6].mxu0 }
 0x126   : > { %2012 = vmatpush3.bf16.msra.mxu1 %v818_v54  ;;  %v769_v61 = vpop.f32.mrb[7].mxu0  ;;  %v1475_v20 = vsel %vm816_vm1, %v1461_v14, 0 }
 0x127   : > { %2108 = vmatprep.subr.msk.bf16.mxu1 %vm816_vm1, %v1024_v55  ;;  %v1038_v7 = vsel %vm816_vm1, %v1024_v55, 0 }
 0x12f   : > { %1228 = vxpose.xlu0.c.b16.start.end [1/1] (short) (narrow) %v784_v48, 64 }
 0x131   : > { %1444 = vxpose.xlu1.c.b16.start.end [1/1] (short) (narrow) %v1442_v56, 64 }
 0x141   : > { %691 = vperm.xlu1 %2169, %v466_v59  }
 0x144   : > { %686 = vperm.xlu0 %2168, %v465_v62  }
 0x145   : > { %701 = vperm.xlu1 %2169, %v468_v63  }
 0x148   : > { %696 = vperm.xlu0 %2168, %v467_v0  }
 0x149   : > { %1673 = vperm.xlu1 %2169, %v470_v1  }
 0x14c   : > { %1668 = vperm.xlu0 %2168, %v469_v2  }
 0x14d   : > { %1683 = vperm.xlu1 %2169, %v472_v3  }
 0x150   : > { %1678 = vperm.xlu0 %2168, %v471_v4  }
 0x188   : > { %v795_v5 = vpop.trf.xlu0 }
 0x189   : > { %2013 = vmatprep.mubr.msk.bf16.mxu1 %vm803_vm2, %v795_v5 }
 0x18a   : > { %v1015_v8 = vpop.trf.xlu1 }
 0x18c   : > { %v796_v6 = vpop.trf.xlu0 }
 0x18d   : > { %2014 = vmatmul.mubr.msk.bf16.vlgmr.msra.gmra.mrb[4].mxu1 %vm803_vm2, %v796_v6 }
 0x18e   : > { %2034 = vmatpush3.bf16.msra.mxu1 %v1038_v7  ;;  %v1016_v11 = vpop.trf.xlu1 }
 0x18f   : > { %2109 = vmatprep.subr.msk.bf16.mxu1 %vm816_vm1, %v2563_v50 }
 0x190   : > { %v797_v9 = vpop.trf.xlu0 }
 0x191   : > { %2017 = vmatprep.mubr.msk.bf16.mxu1 %vm803_vm2, %v797_v9 }
 0x192   : > { %v1017_v12 = vpop.trf.xlu1 }
 0x194   : > { %v798_v10 = vpop.trf.xlu0 }
 0x195   : > { %2018 = vmatmul.mubr.msk.bf16.gmra.mrb[8].mxu1 %vm803_vm2, %v798_v10 }
 0x196   : > { %2035 = vmatprep.mubr.msk.bf16.mxu1 %vm803_vm2, %v1015_v8  ;;  %v1018_v16 = vpop.trf.xlu1 }
 0x198   : > { %v1236_v15 = vpop.trf.xlu0 }
 0x19a   : > { %v1452_v18 = vpop.trf.xlu1 }
 0x19c   : > { %v1237_v17 = vpop.trf.xlu0 }
 0x19d   : > { %2036 = vmatmul.mubr.msk.bf16.vlgmr.msra.gmra.mrb[12].mxu1 %vm803_vm2, %v1016_v11 }
 0x19e   : > { %2056 = vmatpush3.bf16.msra.mxu1 %v1257_v13  ;;  %2039 = vmatprep.mubr.msk.bf16.mxu1 %vm803_vm2, %v1017_v12  ;;  %v1453_v21 = vpop.trf.xlu1 }
 0x19f   : > { %2110 = vmatprep.subr.msk.bf16.mxu1 %vm816_vm1, %v1461_v14 }
 0x1a0   : > { %v1238_v19 = vpop.trf.xlu0 }
 0x1a2   : > { %v1454_v23 = vpop.trf.xlu1 }
 0x1a4   : > { %v1239_v22 = vpop.trf.xlu0 }
 0x1a5   : > { %2040 = vmatmul.mubr.msk.bf16.gmra.mrb[16].mxu1 %vm803_vm2, %v1018_v16 }
 0x1a6   : > { %2057 = vmatprep.mubr.msk.bf16.mxu1 %vm803_vm2, %v1236_v15  ;;  %v1455_v24 = vpop.trf.xlu1 }
 0x1ad   : > { %2058 = vmatmul.mubr.msk.bf16.vlgmr.msra.gmra.mrb[20].mxu1 %vm803_vm2, %v1237_v17 }
 0x1ae   : > { %2078 = vmatpush3.bf16.msra.mxu1 %v1475_v20  ;;  %2061 = vmatprep.mubr.msk.bf16.mxu1 %vm803_vm2, %v1238_v19 }
 0x1b5   : > { %2062 = vmatmul.mubr.msk.bf16.gmra.mrb[24].mxu1 %vm803_vm2, %v1239_v22 }
 0x1b6   : > { %2079 = vmatprep.mubr.msk.bf16.mxu1 %vm803_vm2, %v1452_v18 }
 0x1bd   : > { %2080 = vmatmul.mubr.msk.bf16.vlgmr.msra.gmra.mrb[28].mxu1 %vm803_vm2, %v1453_v21 }
 0x1be   : > { %2083 = vmatprep.mubr.msk.bf16.mxu1 %vm803_vm2, %v1454_v23 }
 0x1c0   : > { %v692_v25 = vpop.permute.xlu1 %691 }
 0x1c1   : > { %v770_v27 = vadd.f32 %v769_v61, %v692_v25 }
 0x1c3   : > { %v687_v26 = vpop.permute.xlu0 %686 }
 0x1c4   : > { %v767_v28 = vadd.f32 %v2570_v58, %v687_v26  ;;  %v702_v29 = vpop.permute.xlu1 %701 }
 0x1c5   : > { %2084 = vmatmul.mubr.msk.bf16.gmra.mrb[32].mxu1 %vm803_vm2, %v1455_v24  ;;  %v778_v32 = vadd.f32 %v2575_v60, %v702_v29 }
 0x1c6   : > { %v2623_v30 = vpack.c.bf16 %v770_v27, %v767_v28 }
 0x1c7   : > { %v697_v31 = vpop.permute.xlu0 %696 }
 0x1c8   : > { %v775_v33 = vadd.f32 %v2568_v57, %v697_v31 }
 0x1ca   : > { %v2627_v34 = vpack.c.bf16 %v778_v32, %v775_v33 }
 0x260   : > { %v2015_v36 = vpop.f32.mrb[4].mxu1 }
 0x261   : > { %v854_v37 = vpop.f32.mrb[5].mxu1  ;;  %v888_v41 = vsel %vm885_vm4, %v2015_v36, -inf }
 0x262   : > { %v2016_v38 = vpop.f32.mrb[6].mxu1  ;;  %v886_v44 = vsel %vm885_vm4, %v854_v37, -inf }
 0x263   : > { %v857_v39 = vpop.f32.mrb[7].mxu1  ;;  %v889_v48 = vsel %vm885_vm4, %v2016_v38, -inf }
 0x264   : > { %v887_v52 = vsel %vm885_vm4, %v857_v39, -inf }
 0x268   : > { %v2632_v40 = vpop.f32.mrb[8].mxu1 }
 0x269   : > { %v894_v42 = vsel %vm885_vm4, %v2632_v40, -inf  ;;  %v870_v43 = vpop.f32.mrb[9].mxu1 }
 0x26a   : > { %v895_v45 = vmax.f32 %v888_v41, %v894_v42  ;;  %v890_v46 = vsel %vm885_vm4, %v870_v43, -inf  ;;  %v2639_v47 = vpop.f32.mrb[10].mxu1 }
 0x26b   : > { %v891_v49 = vmax.f32 %v886_v44, %v890_v46  ;;  %v896_v50 = vsel %vm885_vm4, %v2639_v47, -inf  ;;  %v873_v51 = vpop.f32.mrb[11].mxu1 }
 0x26c   : > { %v897_v53 = vmax.f32 %v889_v48, %v896_v50  ;;  %v892_v54 = vsel %vm885_vm4, %v873_v51, -inf }
 0x26d   : > { %v893_v55 = vmax.f32 %v887_v52, %v892_v54 }
 0x26e   : > { %v899_v56 = vmax.f32 %v895_v45, %v897_v53 }
 0x26f   : > { %v898_v57 = vmax.f32 %v891_v49, %v893_v55 }
 0x270   : > { %v2646_v58 = vpop.f32.mrb[12].mxu1 }
 0x271   : > { %v900_v59 = vmax.f32 %v898_v57, %v899_v56  ;;  %v2648_v60 = vpop.f32.mrb[13].mxu1  ;;  %v1107_v4 = vsel %vm885_vm4, %v2646_v58, -inf }
 0x272   : > { %v2650_v61 = vpop.f32.mrb[14].mxu1  ;;  %v1105_v7 = vsel %vm885_vm4, %v2648_v60, -inf }
 0x273   : > { %v901_v62 = vrot.slane %v900_v59, 4  ;;  %v2652_v63 = vpop.f32.mrb[15].mxu1  ;;  %v1108_v12 = vsel %vm885_vm4, %v2650_v61, -inf }
 0x274   : > { %v1106_v16 = vsel %vm885_vm4, %v2652_v63, -inf }
 0x275   : > { %v902_v0 = vmax.f32 %v900_v59, %v901_v62 }
 0x277   : > { %v903_v1 = vrot.slane %v902_v0, 2 }
 0x278   : > { %v2654_v2 = vpop.f32.mrb[16].mxu1 }
 0x279   : > { %v904_v3 = vmax.f32 %v902_v0, %v903_v1  ;;  %v1113_v5 = vsel %vm885_vm4, %v2654_v2, -inf  ;;  %v2660_v6 = vpop.f32.mrb[17].mxu1 }
 0x27a   : > { %v1114_v8 = vmax.f32 %v1107_v4, %v1113_v5  ;;  %v1109_v9 = vsel %vm885_vm4, %v2660_v6, -inf  ;;  %v2666_v10 = vpop.f32.mrb[18].mxu1 }
 0x27b   : > { %v905_v11 = vrot.slane %v904_v3, 1  ;;  %v1110_v13 = vmax.f32 %v1105_v7, %v1109_v9  ;;  %v1115_v14 = vsel %vm885_vm4, %v2666_v10, -inf  ;;  %v2672_v15 = vpop.f32.mrb[19].mxu1 }
 0x27c   : > { %v1116_v17 = vmax.f32 %v1108_v12, %v1115_v14  ;;  %v1111_v18 = vsel %vm885_vm4, %v2672_v15, -inf }
 0x27d   : > { %v906_v19 = vmax.f32 %v904_v3, %v905_v11  ;;  %v1112_v20 = vmax.f32 %v1106_v16, %v1111_v18 }
 0x27e   : > { %v1118_v21 = vmax.f32 %v1114_v8, %v1116_v17 }
 0x27f   : > { %v907_v22 = vsub.f32 %v854_v37, %v906_v19  ;;  %v908_v23 = vsub.f32 %v857_v39, %v906_v19  ;;  %v909_v24 = vsub.f32 %v2015_v36, %v906_v19  ;;  %v910_v25 = vsub.f32 %v2016_v38, %v906_v19 }
 0x280   : > { %v911_v26 = vsub.f32 %v870_v43, %v906_v19  ;;  %v912_v27 = vsub.f32 %v873_v51, %v906_v19  ;;  %v913_v28 = vsub.f32 %v2632_v40, %v906_v19  ;;  %v1117_v29 = vmax.f32 %v1110_v13, %v1112_v20  ;;  %v2679_v31 = vpop.f32.mrb[20].mxu1 }
 0x281   : > { %v915_v32 = vmul.f32 1.442695, %v907_v22  ;;  %v917_v33 = vmul.f32 1.442695, %v908_v23  ;;  %v919_v41 = vmul.f32 1.442695, %v909_v24  ;;  %v914_v42 = vsub.f32 %v2639_v47, %v906_v19 }
 0x282   : > { %v921_v44 = vmul.f32 1.442695, %v910_v25  ;;  %v1119_v45 = vmax.f32 %v1117_v29, %v1118_v21  ;;  %v923_v46 = vmul.f32 1.442695, %v911_v26  ;;  %v2682_v37 = vpop.f32.mrb[21].mxu1  ;;  %v1326_v51 = vsel %vm885_vm4, %v2679_v31, -inf }
 0x283   : > { %2184 = vpow2.f32 %v915_v32  ;;  %v925_v36 = vmul.f32 1.442695, %v912_v27  ;;  %v2684_v39 = vpop.f32.mrb[22].mxu1  ;;  %v927_v40 = vmul.f32 1.442695, %v913_v28  ;;  %v1324_v55 = vsel %vm885_vm4, %v2682_v37, -inf }
 0x284   : > { %2186 = vpow2.f32 %v917_v33  ;;  %v1120_v38 = vrot.slane %v1119_v45, 4  ;;  %v2686_v43 = vpop.f32.mrb[23].mxu1  ;;  %v929_v50 = vmul.f32 1.442695, %v914_v42  ;;  %v1327_v62 = vsel %vm885_vm4, %v2684_v39, -inf }
 0x285   : > { %2188 = vpow2.f32 %v919_v41  ;;  %v1325_v0 = vsel %vm885_vm4, %v2686_v43, -inf }
 0x286   : > { %2190 = vpow2.f32 %v921_v44  ;;  %v1121_v48 = vmax.f32 %v1119_v45, %v1120_v38 }
 0x287   : > { %2192 = vpow2.f32 %v923_v46 }
 0x288   : > { %2194 = vpow2.f32 %v925_v36  ;;  %v1122_v47 = vrot.slane %v1121_v48, 2  ;;  %v2688_v49 = vpop.f32.mrb[24].mxu1 }
 0x289   : > { %2196 = vpow2.f32 %v927_v40  ;;  %v1332_v52 = vsel %vm885_vm4, %v2688_v49, -inf  ;;  %v2694_v53 = vpop.f32.mrb[25].mxu1 }
 0x28a   : > { %v1123_v54 = vmax.f32 %v1121_v48, %v1122_v47  ;;  %v1333_v56 = vmax.f32 %v1326_v51, %v1332_v52  ;;  %v1328_v57 = vsel %vm885_vm4, %v2694_v53, -inf  ;;  %v2700_v59 = vpop.f32.mrb[26].mxu1  ;;  %2198 = vpow2.f32 %v929_v50 }
 0x28b   : > { %v1329_v1 = vmax.f32 %v1324_v55, %v1328_v57  ;;  %v1334_v3 = vsel %vm885_vm4, %v2700_v59, -inf  ;;  %v2708_v4 = vpop.f32.mrb[27].mxu1 }
 0x28c   : > { %v1124_v5 = vrot.slane %v1123_v54, 1  ;;  %v1335_v7 = vmax.f32 %v1327_v62, %v1334_v3  ;;  %v1330_v8 = vsel %vm885_vm4, %v2708_v4, -inf }
 0x28d   : > { %v2185_v9 = vpop.eup %2184  ;;  %v1331_v11 = vmax.f32 %v1325_v0, %v1330_v8 }
 0x28e   : > { %v2187_v12 = vpop.eup %2186  ;;  %v931_v13 = vsel %vm885_vm4, %v2185_v9, 0.0  ;;  %v2713_v14 = vmax.f32 %v1123_v54, %v1124_v5  ;;  %v1337_v16 = vmax.f32 %v1333_v56, %v1335_v7 }
 0x28f   : > { %v2189_v17 = vpop.eup %2188  ;;  %v932_v18 = vsel %vm885_vm4, %v2187_v12, 0.0  ;;  %v1336_v19 = vmax.f32 %v1329_v1, %v1331_v11  ;;  %v952_v20 = vpack.c.bf16 %v2187_v12, %v2185_v9 }
 0x290   : > { %v2191_v21 = vpop.eup %2190  ;;  %v933_v22 = vadd.f32 %v932_v18, %v931_v13  ;;  %v1126_v23 = vsub.f32 %v2648_v60, %v2713_v14  ;;  %v1127_v24 = vsub.f32 %v2652_v63, %v2713_v14  ;;  %v2720_v25 = vpop.f32.mrb[28].mxu1  ;;  %v934_v27 = vsel %vm885_vm4, %v2189_v17, 0.0 }
 0x291   : > { %v2722_v26 = vpop.eup %2192  ;;  %v1128_v28 = vsub.f32 %v2646_v58, %v2713_v14  ;;  %v1129_v29 = vsub.f32 %v2650_v61, %v2713_v14  ;;  %v1130_v32 = vsub.f32 %v2660_v6, %v2713_v14  ;;  %2022 = vmatpush3.bf16.msra.mxu0 %v952_v20  ;;  %v2731_v60 = vpop.f32.mrb[29].mxu1  ;;  %v936_v41 = vsel %vm885_vm4, %v2191_v21, 0.0 }
 0x292   : > { %v2195_v33 = vpop.eup %2194  ;;  %v935_v63 = vadd.f32 %v934_v27, %v933_v22  ;;  %v1131_v42 = vsub.f32 %v2672_v15, %v2713_v14  ;;  %v1132_v44 = vsub.f32 %v2654_v2, %v2713_v14  ;;  %v2738_v58 = vpop.f32.mrb[30].mxu1  ;;  %2023 = vmatprep.subr.bf16.mxu0 %v2356_v35  ;;  %v938_v6 = vsel %vm885_vm4, %v2722_v26, 0.0 }
 0x293   : > { %v2741_v61 = vpop.eup %2196  ;;  %v1134_v45 = vmul.f32 1.442695, %v1126_v23  ;;  %v1136_v46 = vmul.f32 1.442695, %v1127_v24  ;;  %v1338_v36 = vmax.f32 %v1336_v19, %v1337_v16  ;;  %v2745_v38 = vpop.f32.mrb[31].mxu1  ;;  %v940_v15 = vsel %vm885_vm4, %v2195_v33, 0.0 }
 0x294   : > { %v937_v40 = vadd.f32 %v936_v41, %v935_v63  ;;  %v1138_v48 = vmul.f32 1.442695, %v1128_v28  ;;  %v1140_v47 = vmul.f32 1.442695, %v1129_v29  ;;  %v942_v2 = vsel %vm885_vm4, %v2741_v61, 0.0  ;;  %v2199_v52 = vpop.eup %2198 }
 0x295   : > { %2200 = vpow2.f32 %v1134_v45  ;;  %v1142_v50 = vmul.f32 1.442695, %v1130_v32  ;;  %v1144_v51 = vmul.f32 1.442695, %v1131_v42  ;;  %v1146_v55 = vmul.f32 1.442695, %v1132_v44 }
 0x296   : > { %v939_v54 = vadd.f32 %v938_v6, %v937_v40  ;;  %2202 = vpow2.f32 %v1136_v46  ;;  %v1339_v56 = vrot.slane %v1338_v36, 4  ;;  %v1544_v57 = vsel %vm885_vm4, %v2720_v25, -inf }
 0x297   : > { %2204 = vpow2.f32 %v1138_v48  ;;  %v1542_v62 = vsel %vm885_vm4, %v2731_v60, -inf  ;;  %v1545_v0 = vsel %vm885_vm4, %v2738_v58, -inf  ;;  %v953_v5 = vpack.c.bf16 %v2191_v21, %v2189_v17 }
 0x298   : > { %v941_v1 = vadd.f32 %v940_v15, %v939_v54  ;;  %2206 = vpow2.f32 %v1140_v47  ;;  %v1340_v3 = vmax.f32 %v1338_v36, %v1339_v56  ;;  %v2756_v7 = vpop.f32.mrb[32].mxu1  ;;  %v954_v8 = vpack.c.bf16 %v2195_v33, %v2722_v26 }
 0x299   : > { %2208 = vpow2.f32 %v1142_v50  ;;  %v1550_v9 = vsel %vm885_vm4, %v2756_v7, -inf  ;;  %v2761_v11 = vpop.f32.mrb[33].mxu1  ;;  %v955_v12 = vpack.c.bf16 %v2199_v52, %v2741_v61  ;;  %2024 = vmatpush3.bf16.msra.mxu0 %v953_v5  ;;  %v1543_v17 = vsel %vm885_vm4, %v2745_v38, -inf }
 0x29a   : > { %v943_v13 = vadd.f32 %v942_v2, %v941_v1  ;;  %2210 = vpow2.f32 %v1144_v51  ;;  %v1341_v16 = vrot.slane %v1340_v3, 2  ;;  %v1551_v18 = vmax.f32 %v1544_v57, %v1550_v9  ;;  %v2764_v19 = vpop.f32.mrb[34].mxu1  ;;  %2025 = vmatprep.subr.bf16.mxu0 %v2356_v35 }
 0x29b   : > { %v1546_v20 = vsel %vm885_vm4, %v2761_v11, -inf  ;;  %v1552_v21 = vsel %vm885_vm4, %v2764_v19, -inf  ;;  %v2773_v22 = vpop.f32.mrb[35].mxu1  ;;  %v1133_v23 = vsub.f32 %v2666_v10, %v2713_v14  ;;  %2212 = vpow2.f32 %v1146_v55 }
 0x29c   : > { %v1342_v24 = vmax.f32 %v1340_v3, %v1341_v16  ;;  %v1547_v26 = vmax.f32 %v1542_v62, %v1546_v20  ;;  %v1553_v27 = vmax.f32 %v1545_v0, %v1552_v21  ;;  %v1548_v28 = vsel %vm885_vm4, %v2773_v22, -inf }
 0x29d   : > { %v1549_v29 = vmax.f32 %v1543_v17, %v1548_v28  ;;  %v1148_v32 = vmul.f32 1.442695, %v1133_v23  ;;  %v944_v33 = vsel %vm885_vm4, %v2199_v52, 0.0  ;;  %2026 = vmatpush3.bf16.msra.mxu0 %v954_v8 }
 0x29e   : > { %v1343_v63 = vrot.slane %v1342_v24, 1  ;;  %v1555_v41 = vmax.f32 %v1551_v18, %v1553_v27  ;;  %v2780_v42 = vadd.f32 %v944_v33, %v943_v13  ;;  %2027 = vmatprep.subr.bf16.mxu0 %v2356_v35 }
 0x29f   : > { %v2201_v44 = vpop.eup %2200  ;;  %v1554_v10 = vmax.f32 %v1547_v26, %v1549_v29  ;;  %2214 = vpow2.f32 %v1148_v32 }
 0x2a0   : > { %v2203_v14 = vpop.eup %2202  ;;  %v1150_v61 = vsel %vm885_vm4, %v2201_v44, 0.0  ;;  %v1344_v6 = vmax.f32 %v1342_v24, %v1343_v63 }
 0x2a1   : > { %v2205_v45 = vpop.eup %2204  ;;  %v1151_v46 = vsel %vm885_vm4, %v2203_v14, 0.0  ;;  %v1556_v36 = vmax.f32 %v1554_v10, %v1555_v41  ;;  %v1171_v40 = vpack.c.bf16 %v2203_v14, %v2201_v44  ;;  %2028 = vmatpush3.bf16.msra.mxu0 %v955_v12  ;;  %v1176_v10 = vrot.slane %v2623_v30, 4 }
 0x2a2   : > { %v2207_v15 = vpop.eup %2206  ;;  %v1152_v48 = vadd.f32 %v1151_v46, %v1150_v61  ;;  %v1345_v47 = vsub.f32 %v2682_v37, %v1344_v6  ;;  %v1346_v2 = vsub.f32 %v2686_v43, %v1344_v6  ;;  %v1153_v51 = vsel %vm885_vm4, %v2205_v45, 0.0  ;;  %2043 = vmatprep.subr.bf16.mxu0 %v2356_v35 }
 0x2a3   : > { %v2209_v50 = vpop.eup %2208  ;;  %v1347_v52 = vsub.f32 %v2679_v31, %v1344_v6  ;;  %v1348_v54 = vsub.f32 %v2684_v39, %v1344_v6  ;;  %v1349_v55 = vsub.f32 %v2694_v53, %v1344_v6  ;;  %v1350_v62 = vsub.f32 %v2708_v4, %v1344_v6 }
 0x2a4   : > { %v2211_v56 = vpop.eup %2210  ;;  %v1154_v57 = vadd.f32 %v1153_v51, %v1152_v48  ;;  %v1351_v37 = vsub.f32 %v2688_v49, %v1344_v6  ;;  %v1155_v43 = vsel %vm885_vm4, %v2207_v15, 0.0  ;;  %v1353_v0 = vmul.f32 1.442695, %v1345_v47  ;;  %2030 = vmatmul.mubr.msk.bf16.vlgmr.msra.gmra.mrb[8].mxu0 %vm885_vm4, %v2623_v30 }
 0x2a5   : > { %v1355_v1 = vmul.f32 1.442695, %v1346_v2  ;;  %v1557_v3 = vrot.slane %v1556_v36, 4  ;;  %v1157_v39 = vsel %vm885_vm4, %v2209_v50, 0.0  ;;  %v1357_v53 = vmul.f32 1.442695, %v1347_v52  ;;  %2044 = vmatpush3.bf16.msra.mxu0 %v1171_v40  ;;  %2051 = vmatprep.mubr.msk.bf16.mxu0 %vm2357_vm3, %v2356_v35  ;;  %v2213_v4 = vpop.eup %2212 }
 0x2a6   : > { %v1156_v31 = vadd.f32 %v1155_v43, %v1154_v57  ;;  %v1359_v5 = vmul.f32 1.442695, %v1348_v54  ;;  %v1159_v49 = vsel %vm885_vm4, %v2211_v56, 0.0  ;;  %2216 = vpow2.f32 %v1353_v0  ;;  %2045 = vmatprep.subr.bf16.mxu0 %v2356_v35 }
 0x2a7   : > { %v1361_v8 = vmul.f32 1.442695, %v1349_v55  ;;  %v1363_v9 = vmul.f32 1.442695, %v1350_v62  ;;  %2218 = vpow2.f32 %v1355_v1  ;;  %v1558_v13 = vmax.f32 %v1556_v36, %v1557_v3 }
 0x2a8   : > { %v1158_v12 = vadd.f32 %v1157_v39, %v1156_v31  ;;  %v1172_v16 = vpack.c.bf16 %v2207_v15, %v2205_v45  ;;  %2220 = vpow2.f32 %v1357_v53  ;;  %v1365_v17 = vmul.f32 1.442695, %v1351_v37 }
 0x2a9   : > { %v2215_v18 = vpop.eup %2214  ;;  %v1173_v20 = vpack.c.bf16 %v2211_v56, %v2209_v50  ;;  %v1352_v21 = vsub.f32 %v2700_v59, %v1344_v6  ;;  %2222 = vpow2.f32 %v1359_v5  ;;  %v1559_v24 = vrot.slane %v1558_v13, 2 }
 0x2aa   : > { %v1160_v23 = vadd.f32 %v1159_v49, %v1158_v12  ;;  %2046 = vmatpush3.bf16.msra.mxu0 %v1172_v16  ;;  %v1174_v26 = vpack.c.bf16 %v2215_v18, %v2213_v4  ;;  %v1161_v27 = vsel %vm885_vm4, %v2213_v4, 0.0  ;;  %2224 = vpow2.f32 %v1361_v8 }
 0x2ab   : > { %2047 = vmatprep.subr.bf16.mxu0 %v2356_v35  ;;  %v1367_v28 = vmul.f32 1.442695, %v1352_v21  ;;  %2226 = vpow2.f32 %v1363_v9  ;;  %v1560_v32 = vmax.f32 %v1558_v13, %v1559_v24  ;;  %v1163_v33 = vsel %vm885_vm4, %v2215_v18, 0.0 }
 0x2ac   : > { %v1162_v29 = vadd.f32 %v1161_v27, %v1160_v23  ;;  %2228 = vpow2.f32 %v1365_v17 }
 0x2ad   : > { %v1561_v63 = vrot.slane %v1560_v32, 1  ;;  %2230 = vpow2.f32 %v1367_v28 }
 0x2ae   : > { %2048 = vmatpush3.bf16.msra.mxu0 %v1173_v20  ;;  %v2806_v59 = vadd.f32 %v1163_v33, %v1162_v29 }
 0x2af   : > { %2049 = vmatprep.subr.bf16.mxu0 %v2356_v35  ;;  %v1562_v41 = vmax.f32 %v1560_v32, %v1561_v63 }
 0x2b0   : > { %v2217_v44 = vpop.eup %2216 }
 0x2b1   : > { %v2219_v14 = vpop.eup %2218  ;;  %v1369_v61 = vsel %vm885_vm4, %v2217_v44, 0.0  ;;  %v1563_v6 = vsub.f32 %v2731_v60, %v1562_v41  ;;  %v1564_v45 = vsub.f32 %v2745_v38, %v1562_v41  ;;  %v1565_v46 = vsub.f32 %v2720_v25, %v1562_v41 }
 0x2b2   : > { %2050 = vmatpush3.bf16.msra.mxu0 %v1174_v26  ;;  %v2221_v36 = vpop.eup %2220  ;;  %v1370_v40 = vsel %vm885_vm4, %v2219_v14, 0.0  ;;  %v1566_v15 = vsub.f32 %v2738_v58, %v1562_v41  ;;  %v1567_v48 = vsub.f32 %v2761_v11, %v1562_v41  ;;  %v1568_v47 = vsub.f32 %v2773_v22, %v1562_v41 }
 0x2b3   : > { %2065 = vmatprep.subr.bf16.mxu0 %v2356_v35  ;;  %v2223_v30 = vpop.eup %2222  ;;  %v1371_v2 = vadd.f32 %v1370_v40, %v1369_v61  ;;  %v1569_v60 = vsub.f32 %v2756_v7, %v1562_v41  ;;  %v1571_v50 = vmul.f32 1.442695, %v1563_v6  ;;  %v1372_v25 = vsel %vm885_vm4, %v2221_v36, 0.0 }
 0x2b4   : > { %v2225_v38 = vpop.eup %2224  ;;  %v1573_v51 = vmul.f32 1.442695, %v1564_v45  ;;  %v1575_v52 = vmul.f32 1.442695, %v1565_v46  ;;  %v1390_v54 = vpack.c.bf16 %v2219_v14, %v2217_v44  ;;  %v1577_v11 = vmul.f32 1.442695, %v1566_v15 }
 0x2b5   : > { %2052 = vmatmul.mubr.msk.bf16.vlgmr.msra.gmra.mrb[12].mxu0 %vm885_vm4, %v1176_v10  ;;  %v2227_v58 = vpop.eup %2226  ;;  %v1373_v55 = vadd.f32 %v1372_v25, %v1371_v2  ;;  %2232 = vpow2.f32 %v1571_v50  ;;  %v1374_v56 = vsel %vm885_vm4, %v2223_v30, 0.0  ;;  %v1579_v7 = vmul.f32 1.442695, %v1567_v48 }
 0x2b6   : > { %2073 = vmatprep.mubr.msk.bf16.mxu0 %vm2357_vm3, %v2356_v35  ;;  %v2229_v22 = vpop.eup %2228  ;;  %2234 = vpow2.f32 %v1573_v51  ;;  %v1581_v57 = vmul.f32 1.442695, %v1568_v47  ;;  %2066 = vmatpush3.bf16.msra.mxu0 %v1390_v54  ;;  %v1376_v43 = vsel %vm885_vm4, %v2225_v38, 0.0  ;;  %v1583_v0 = vmul.f32 1.442695, %v1569_v60 }
 0x2b7   : > { %v2231_v62 = vpop.eup %2230  ;;  %v1375_v37 = vadd.f32 %v1374_v56, %v1373_v55  ;;  %2236 = vpow2.f32 %v1575_v52  ;;  %2067 = vmatprep.subr.bf16.mxu0 %v2356_v35  ;;  %v1391_v1 = vpack.c.bf16 %v2223_v30, %v2221_v36  ;;  %v1392_v3 = vpack.c.bf16 %v2227_v58, %v2225_v38  ;;  %v2182_v30 = vld [vmem:[#allocation3] sm:$0xff]  }
 0x2b8   : > { %2238 = vpow2.f32 %v1577_v11  ;;  %v1393_v31 = vpack.c.bf16 %v2231_v62, %v2229_v22  ;;  %v1570_v53 = vsub.f32 %v2764_v19, %v1562_v41  ;;  %v1378_v5 = vsel %vm885_vm4, %v2227_v58, 0.0  ;;  %2103 = vmatprep.mubr.msk.bf16.mxu1 %vm527_vm0, %v2182_v30 }
 0x2b9   : > { %v1377_v39 = vadd.f32 %v1376_v43, %v1375_v37  ;;  %2240 = vpow2.f32 %v1579_v7  ;;  %v1380_v8 = vsel %vm885_vm4, %v2229_v22, 0.0  ;;  %v1382_v12 = vsel %vm885_vm4, %v2231_v62, 0.0 }
 0x2ba   : > { %2242 = vpow2.f32 %v1581_v57  ;;  %2068 = vmatpush3.bf16.msra.mxu0 %v1391_v1  ;;  %v1585_v49 = vmul.f32 1.442695, %v1570_v53  ;;  %v1613_v47 = vrot.slane %v2627_v34, 4  ;;  %v946_v2 = vrot.slane %v2780_v42, 4 }
 0x2bb   : > { %v1379_v4 = vadd.f32 %v1378_v5, %v1377_v39  ;;  %2244 = vpow2.f32 %v1583_v0  ;;  %2069 = vmatprep.subr.bf16.mxu0 %v2356_v35  ;;  %v1165_v51 = vrot.slane %v2806_v59, 4 }
 0x2bc   : > { %2246 = vpow2.f32 %v1585_v49  ;;  %v947_v60 = vadd.f32 %v946_v2, %v2780_v42 }
 0x2bd   : > { %v1381_v9 = vadd.f32 %v1380_v8, %v1379_v4 }
 0x2be   : > { %2070 = vmatpush3.bf16.msra.mxu0 %v1392_v3  ;;  %v948_v50 = vrot.slane %v947_v60, 2 }
 0x2bf   : > { %v2233_v13 = vpop.eup %2232  ;;  %2071 = vmatprep.subr.bf16.mxu0 %v2356_v35  ;;  %v2833_v19 = vadd.f32 %v1382_v12, %v1381_v9 }
 0x2c0   : > { %v2235_v16 = vpop.eup %2234  ;;  %v1587_v18 = vsel %vm885_vm4, %v2233_v13, 0.0  ;;  %v949_v38 = vadd.f32 %v948_v50, %v947_v60 }
 0x2c1   : > { %v2237_v17 = vpop.eup %2236  ;;  %v1588_v20 = vsel %vm885_vm4, %v2235_v16, 0.0  ;;  %v1608_v21 = vpack.c.bf16 %v2235_v16, %v2233_v13  ;;  %v1384_v55 = vrot.slane %v2833_v19, 4 }
 0x2c2   : > { %v2239_v23 = vpop.eup %2238  ;;  %v1589_v24 = vadd.f32 %v1588_v20, %v1587_v18  ;;  %2072 = vmatpush3.bf16.msra.mxu0 %v1393_v31  ;;  %v1590_v27 = vsel %vm885_vm4, %v2237_v17, 0.0  ;;  %v950_v25 = vrot.slane %v949_v38, 1 }
 0x2c3   : > { %v2241_v26 = vpop.eup %2240  ;;  %2087 = vmatprep.subr.bf16.mxu0 %v2356_v35  ;;  %v1609_v28 = vpack.c.bf16 %v2239_v23, %v2237_v17  ;;  %v1592_v63 = vsel %vm885_vm4, %v2239_v23, 0.0  ;;  %v1385_v43 = vadd.f32 %v1384_v55, %v2833_v19 }
 0x2c4   : > { %v2243_v29 = vpop.eup %2242  ;;  %v1591_v32 = vadd.f32 %v1590_v27, %v1589_v24  ;;  %v1594_v14 = vsel %vm885_vm4, %v2241_v26, 0.0  ;;  %v951_v52 = vadd.f32 %v950_v25, %v949_v38 }
 0x2c5   : > { %v2245_v33 = vpop.eup %2244  ;;  %2074 = vmatmul.mubr.msk.bf16.vlgmr.msra.gmra.mrb[16].mxu0 %vm885_vm4, %v2627_v34  ;;  %v1610_v41 = vpack.c.bf16 %v2243_v29, %v2241_v26  ;;  %v1596_v45 = vsel %vm885_vm4, %v2243_v29, 0.0 }
 0x2c6   : > { %v1593_v44 = vadd.f32 %v1592_v63, %v1591_v32  ;;  %2088 = vmatpush3.bf16.msra.mxu0 %v1608_v21  ;;  %2095 = vmatprep.mubr.msk.bf16.mxu0 %vm2357_vm3, %v2356_v35  ;;  %v2247_v10 = vpop.eup %2246  ;;  %v1598_v36 = vsel %vm885_vm4, %v2245_v33, 0.0  ;;  %2248 = vrcp.f32 %v951_v52 }
 0x2c7   : > { %2089 = vmatprep.subr.bf16.mxu0 %v2356_v35  ;;  %v1611_v6 = vpack.c.bf16 %v2247_v10, %v2245_v33  ;;  %v1600_v15 = vsel %vm885_vm4, %v2247_v10, 0.0 }
 0x2c8   : > { %v1595_v61 = vadd.f32 %v1594_v14, %v1593_v44 }
 0x2ca   : > { %v1597_v46 = vadd.f32 %v1596_v45, %v1595_v61  ;;  %2090 = vmatpush3.bf16.msra.mxu0 %v1609_v28  ;;  %v2183_v45 = vld [vmem:[#allocation3 + $0x8] sm:$0xff]  }
 0x2cb   : > { %2091 = vmatprep.subr.bf16.mxu0 %v2356_v35 }
 0x2cc   : > { %v1599_v40 = vadd.f32 %v1598_v36, %v1597_v46  ;;  %v1669_v46 = vpop.permute.xlu0 %1668  ;;  %v1674_v36 = vpop.permute.xlu1 %1673 }
 0x2ce   : > { %2092 = vmatpush3.bf16.msra.mxu0 %v1610_v41  ;;  %v1601_v48 = vadd.f32 %v1600_v15, %v1599_v40 }
 0x2cf   : > { %2093 = vmatprep.subr.bf16.mxu0 %v2356_v35  ;;  %v1166_v35 = vadd.f32 %v1165_v51, %v2806_v59  ;;  %v1386_v59 = vrot.slane %v1385_v43, 2 }
 0x2d0   : > { %v2249_v11 = vpop.eup %2248  ;;  %v1602_v3 = vrot.slane %v1601_v48, 4  ;;  %v1679_v40 = vpop.permute.xlu0 %1678 }
 0x2d1   : > { %v1167_v54 = vrot.slane %v1166_v35, 2  ;;  %v1387_v0 = vadd.f32 %v1386_v59, %v1385_v43  ;;  %v1684_v30 = vpop.permute.xlu1 %1683 }
 0x2d2   : > { %2094 = vmatpush3.bf16.msra.mxu0 %v1611_v6  ;;  %v1603_v12 = vadd.f32 %v1602_v3, %v1601_v48 }
 0x2d3   : > { %v1168_v34 = vadd.f32 %v1167_v54, %v1166_v35  ;;  %v1388_v1 = vrot.slane %v1387_v0, 1 }
 0x2d4   : > { %v1604_v19 = vrot.slane %v1603_v12, 2 }
 0x2d5   : > { %2096 = vmatmul.mubr.msk.bf16.vlgmr.msra.gmra.mrb[20].mxu0 %vm885_vm4, %v1613_v47  ;;  %v1169_v58 = vrot.slane %v1168_v34, 1  ;;  %v1389_v9 = vadd.f32 %v1388_v1, %v1387_v0 }
 0x2d6   : > { %v1605_v16 = vadd.f32 %v1604_v19, %v1603_v12 }
 0x2d7   : > { %v1170_v57 = vadd.f32 %v1169_v58, %v1168_v34 }
 0x2d8   : > { %v1606_v17 = vrot.slane %v1605_v16, 1 }
 0x2d9   : > { %2250 = vrcp.f32 %v1170_v57 }
 0x2da   : > { %2252 = vrcp.f32 %v1389_v9  ;;  %v1607_v27 = vadd.f32 %v1606_v17, %v1605_v16 }
 0x2dc   : > { %2254 = vrcp.f32 %v1607_v27 }
 0x2e3   : > { %v2251_v31 = vpop.eup %2250 }
 0x2e4   : > { %v2253_v20 = vpop.eup %2252 }
 0x2e6   : > { %v2255_v32 = vpop.eup %2254 }
 0x377   : > { %v993_v22 = vpop.f32.mrb[8].mxu0 }
 0x378   : > { %v1000_v56 = vmul.f32 %v2249_v11, %v993_v22  ;;  %v2031_v7 = vpop.f32.mrb[9].mxu0 }
 0x379   : > { %v996_v42 = vpop.f32.mrb[10].mxu0 }
 0x37a   : > { %v1001_v62 = vpack.c.bf16 %v1000_v56, %v1000_v56  ;;  %v2032_v37 = vpop.f32.mrb[11].mxu0 }
 0x37c   : > { %1003 = vst.msk [vmem:[#allocation2] sm:$0xf] %vm1002_vm5, %v1001_v62 }
 0x388   : > { %v1214_v39 = vpop.f32.mrb[12].mxu0 }
 0x389   : > { %v1221_v53 = vmul.f32 %v2251_v31, %v1214_v39  ;;  %v2053_v5 = vpop.f32.mrb[13].mxu0 }
 0x38a   : > { %v1217_v4 = vpop.f32.mrb[14].mxu0 }
 0x38b   : > { %v1222_v49 = vpack.c.bf16 %v1221_v53, %v1221_v53  ;;  %v2054_v8 = vpop.f32.mrb[15].mxu0 }
 0x38d   : > { %v1224_v13 = vrot.slane %v1222_v49, 4 }
 0x38f   : > { %1227 = vst.msk [vmem:[#allocation2] sm:$0xf0] %vm1226_vm6, %v1224_v13 }
 0x396   : > { %v1664_v18 = vld [vmem:[#allocation2] sm:$0xff] }
 0x397   : > { %2099 = vmatprep.subr.bf16.mxu1 %v1664_v18 }
 0x398   : > { %2100 = vmatpush3.bf16.msra.mxu1 %v1664_v18  ;;  %v1431_v21 = vpop.f32.mrb[16].mxu0 }
 0x399   : > { %v1438_v23 = vmul.f32 %v2253_v20, %v1431_v21  ;;  %v2075_v24 = vpop.f32.mrb[17].mxu0 }
 0x39a   : > { %v1434_v26 = vpop.f32.mrb[18].mxu0 }
 0x39b   : > { %v1439_v28 = vpack.c.bf16 %v1438_v23, %v1438_v23  ;;  %v2076_v29 = vpop.f32.mrb[19].mxu0 }
 0x39d   : > { %1440 = vst.msk [vmem:[#allocation2 + $0x8] sm:$0xf] %vm1002_vm5, %v1439_v28 }
 0x3a8   : > { %v1651_v33 = vpop.f32.mrb[20].mxu0 }
 0x3a9   : > { %v1658_v63 = vmul.f32 %v2255_v32, %v1651_v33  ;;  %v2097_v41 = vpop.f32.mrb[21].mxu0 }
 0x3aa   : > { %v1654_v44 = vpop.f32.mrb[22].mxu0 }
 0x3ab   : > { %v1659_v10 = vpack.c.bf16 %v1658_v63, %v1658_v63  ;;  %v2098_v14 = vpop.f32.mrb[23].mxu0 }
 0x3ad   : > { %v1661_v61 = vrot.slane %v1659_v10, 4 }
 0x3af   : > { %1663 = vst.msk [vmem:[#allocation2 + $0x8] sm:$0xf0] %vm1226_vm6, %v1661_v61 }
 0x3b6   : > { %v1665_v6 = vld [vmem:[#allocation2 + $0x8] sm:$0xff] }
 0x3b7   : > { %2101 = vmatprep.subr.bf16.mxu1 %v1665_v6 }
 0x3b8   : > { %2102 = vmatpush3.bf16.msra.mxu1 %v1665_v6 }
 0x3bb   : > { %2104 = vmatmul.mubr.msk.bf16.vlgmr.msra.gmra.mrb[36].mxu1 %vm527_vm0, %v2183_v45 }
 0x48e   : > { %v2105_v15 = vpop.f32.mrb[36].mxu1 }
 0x48f   : > { %v1745_v48 = vadd.f32 %v2105_v15, %v1679_v40  ;;  %v1736_v47 = vpop.f32.mrb[37].mxu1 }
 0x490   : > { %v1737_v2 = vadd.f32 %v1736_v47, %v1669_v46  ;;  %v2106_v60 = vpop.f32.mrb[38].mxu1 }
 0x491   : > { %1753 = vst.msk [vmem:[%s424_s0 + $0x10] sm:$0xff] %vm885_vm4, %v1745_v48  ;;  %v1748_v50 = vadd.f32 %v2106_v60, %v1684_v30  ;;  %v1739_v38 = vpop.f32.mrb[39].mxu1 }
 0x492   : > { %1751 = vst.msk [vmem:[%s424_s0] sm:$0xff] %vm885_vm4, %v1737_v2  ;;  %v1740_v25 = vadd.f32 %v1739_v38, %v1674_v36 }
 0x493   : > { %1754 = vst.msk [vmem:[%s424_s0 + $0x18] sm:$0xff] %vm885_vm4, %v1748_v50 }
 0x494   : > { %1752 = vst.msk [vmem:[%s424_s0 + $0x8] sm:$0xff] %vm885_vm4, %v1740_v25 }
 0x495   : > { %2297 = shalt.err (!%p2294_p7)
}
 0x496   : > { %s2298_s22 = scalar_lea.hbm %s2874_s21, 512  ;;  %s2302_s16 = scalar_lea.hbm %s2930_s11, 1024 }
 0x497   : > { %p2299_p8 = scmp.ne.s32.totalorder %s2874_s21, %s2298_s22  ;;  %p2303_p1 = scmp.lt.u32.totalorder %s2874_s21, %s2930_s11 }
 0x498   : > { %p2304_p0 = scmp.lt.u32.totalorder %s2302_s16, %s2298_s22  ;;  %p2306_p6 = scmp.lt.u32.totalorder %s2298_s22, %s2874_s21 }
 0x499   : > { %p2300_p11 = pnand %p2299_p8, %p2944_p9 }
 0x49a   : > { %p2305_p5 = por %p2304_p0, %p2303_p1 }
 0x49b   : > { %p2301_p13 = pneg %p2300_p11 }
 0x49c   : > { %p2307_p10 = por %p2306_p6, %p2305_p5 }
 0x49e   : > { %p2308_p12 = pnand %p2307_p10, %p2301_p13 }
 0x4a0   : > { %2311 = shalt.err (!%p2308_p12)
}
 0x4a1   : > { %s2359_s30 = smov 128   ;;  %s2360_s14 = smov 8  }
 0x4a2   : > { %2115 = dma.vmem_to_hbm [thread:$0]  (%p2944_p9), %s2868_s26, 512, %s2874_s21, %s2878_s29, %s2359_s30, %s2359_s30, %s2360_s14  }
 0x4a3 PF: > { %p2127_p2 = scmp.ge.s32.totalorder %s2350_s20, 2  ;;  %s1784_s13 = sand.u32 1, %s2338_s17  }
 0x4a4   : > { %p2945_p3 = scmp.ne.s32.totalorder %s2937_s28, 0  ;;  %s1785_s15 = scalar_lea.sflag [#allocation5], %s1784_s13 }
 0x4a6   : > { %p2122_p4 = pnand %p2127_p2, %p2945_p3 }
 0x4a8   : > { %2333 = dma.done.wait (!%p2122_p4), %s1785_s15, 512  }
 0x4a9   : > { %2335 = vsyncadd (!%p2122_p4), %s1785_s15, 4294966784  ;;  %s2946_s22 = sld [smem:[#allocation9_spill]]  ;;  %p22_p7 = scmp.ge.s32.totalorder %s2446_s23, 4  }
 0x4aa   : > { %s2947_s17 = smov %s2342_s18  ;;  %s2948_s18 = smov %s2346_s19 }
 0x4ab   : > { %s2950_s20 = smov %s2446_s23  ;;  %24 = sbr.rel (!%p22_p7) target bundleno = 6 (0x6), region = 110 }
 0x4af   : > { %s2949_s19 = smov %s2946_s22 }
 0x4b2   :  { %1790 = vsyncpa [#allocation4], 1 }
 0x4b3   :  { %1792 = vsyncpa [#allocation4 + $0x1], 1 }
 0x4b4   :  { %1793 = vsyncpa [#allocation5], 1 }
 0x4b5   :  { %1795 = vsyncpa [#allocation5 + $0x1], 1 }

</bundles_post_ra>
